<compile_context>
chip_gen: v6e
topology: v6e:2x2x1
jax: 0.10.0
libtpu: 0.0.40
codegen_flags: <defaults>
</compile_context>

<pallas_src>
import jax
import jax.numpy as jnp
from jax import lax
from jax.experimental import pallas as pl
from jax.experimental.pallas import tpu as pltpu  # noqa: F401  (TPU backend)

# ----------------------------- model sizes ---------------------------------
B = 2                 # batch
S = 8                 # encoder input sequence length
E = 16                # embedding dim
H = 32                # GRU hidden dim
V = 24                # vocab size
VP = 128              # vocab padded to a full 128-lane vreg (lane-dense)
MAX_TARGET_LEN = 6
T = MAX_TARGET_LEN
NUM_LAYERS = 1
GO_IDX = 1            # vocloader.word2idx['<GO>']
NEG_BIG = -1e30       # logit value for padded vocab lanes (never wins argmax)
TB = T * B            # decoder logit rows actually produced
TB_PAD = ((TB + 7) // 8) * 8   # pad to sublane-dense slab (16 rows)


# ----------------------------- Pallas kernel -------------------------------
def _gru_step(gi, gh, h):
    """PyTorch GRU cell from pre-computed, bias-added gate pre-activations.

    gi/gh: [B, 3H] with gate order (r, z, n).
      r = sigmoid(gi_r + gh_r)
      z = sigmoid(gi_z + gh_z)
      n = tanh(gi_n + r * gh_n)       (gh_n already includes b_hn)
      h' = (1 - z) * n + z * h
    """
    r = jax.nn.sigmoid(gi[:, 0:H] + gh[:, 0:H])
    z = jax.nn.sigmoid(gi[:, H:2 * H] + gh[:, H:2 * H])
    n = jnp.tanh(gi[:, 2 * H:3 * H] + r * gh[:, 2 * H:3 * H])
    return (1.0 - z) * n + z * h


def _seq2seq_kernel(len_ref, tok_ref,
                    ewi_ref, ewh_ref, ebi_ref, ebh_ref,
                    dwi_ref, dwh_ref, dbi_ref, dbh_ref,
                    ow_ref, ob_ref,
                    logits_ref, h_out_ref):
    """Entire encoder + greedy-decoder forward in a single kernel.

    len_ref : [B,1] i32      sequence lengths (pack_padded mask)
    tok_ref : [S*B,1] i32    step-major input tokens
    ewi_ref : [VP,3H] f32    enc_emb(padded) @ W_i_enc   (gather folded in)
    ewh_ref : [H,3H]         enc W_h
    ebi/ebh : [1,3H]         enc biases
    dwi_ref : [VP,3H]        dec_emb(padded) @ W_i_dec
    dwh_ref : [H,3H]         dec W_h
    dbi/dbh : [1,3H]         dec biases
    ow_ref  : [H,VP]         vocab projection (zero pad cols)
    ob_ref  : [1,VP]         vocab bias (-1e30 pad cols)
    logits_ref : [TB_PAD,VP] out, rows t*B:(t+1)*B hold step-t logits
    h_out_ref  : [B,H]       out, final decoder hidden
    """
    lengths = len_ref[...]                                    # [B,1] i32

    # ---------------- encoder ----------------
    # In-kernel token gather + input gate projection, folded into ONE matmul
    # outside the recurrence: onehot([S*B,VP]) @ (enc_emb @ W_i)[VP,3H].
    tok = tok_ref[...]                                        # [S*B,1] i32
    lane_sb = lax.broadcasted_iota(jnp.int32, (S * B, VP), 1)
    onehot_seq = (lane_sb == tok).astype(jnp.float32)         # [S*B,VP]
    gi_all = (jnp.dot(onehot_seq, ewi_ref[...],
                      preferred_element_type=jnp.float32)
              + jnp.broadcast_to(ebi_ref[...], (S * B, 3 * H)))  # [S*B,3H]

    ewh = ewh_ref[...]
    ebh_b = jnp.broadcast_to(ebh_ref[...], (B, 3 * H))        # hoisted
    h = jnp.zeros((B, H), jnp.float32)
    for t in range(S):                                        # static unroll
        gi = gi_all[t * B:(t + 1) * B]                        # static slice
        gh = jnp.dot(h, ewh, preferred_element_type=jnp.float32) + ebh_b
        h_new = _gru_step(gi, gh, h)
        # pack_padded semantics: freeze hidden past each sequence end.
        h = jnp.where(t < lengths, h_new, h)

    # ---------------- greedy decoder ----------------
    dwi = dwi_ref[...]
    dwh = dwh_ref[...]
    ow = ow_ref[...]
    dbi_b = jnp.broadcast_to(dbi_ref[...], (B, 3 * H))        # hoisted
    dbh_b = jnp.broadcast_to(dbh_ref[...], (B, 3 * H))
    ob_b = jnp.broadcast_to(ob_ref[...], (B, VP))
    lane_vp = lax.broadcasted_iota(jnp.int32, (B, VP), 1)     # hoisted

    ids = jnp.full((B, 1), GO_IDX, jnp.int32)                 # <GO> start token
    logits_steps = []
    for t in range(T):                                        # static unroll
        # Embedding gather folded into the input projection: onehot @ (emb@Wi)
        onehot = (lane_vp == ids).astype(jnp.float32)         # [B,VP]
        gi = jnp.dot(onehot, dwi, preferred_element_type=jnp.float32) + dbi_b
        gh = jnp.dot(h, dwh, preferred_element_type=jnp.float32) + dbh_b
        h = _gru_step(gi, gh, h)
        logits = jnp.dot(h, ow, preferred_element_type=jnp.float32) + ob_b
        logits_steps.append(logits)                           # [B,VP]
        # greedy feedback: argmax(log_softmax(x)) == argmax(x); pads = -1e30.
        m = jnp.max(logits, axis=1, keepdims=True)
        ids = jnp.min(jnp.where(logits == m, lane_vp, VP),
                      axis=1, keepdims=True)                  # [B,1]

    # Single sublane/lane-dense store of the whole logits slab.
    if TB_PAD > TB:
        logits_steps.append(jnp.zeros((TB_PAD - TB, VP), jnp.float32))
    logits_ref[...] = jnp.concatenate(logits_steps, axis=0)   # [TB_PAD,VP]
    h_out_ref[...] = h


def _full_spec(arr):
    # No grid -> index_map takes no arguments; block == full array.
    return pl.BlockSpec(arr.shape, lambda: tuple(0 for _ in arr.shape))


def fused_seq2seq(lengths_2d, tokens_sb, params):
    """One pallas_call for the whole forward. Returns ([TB_PAD,VP], [B,H])."""
    args = (lengths_2d, tokens_sb,
            params["enc_emb_wi"], params["enc_wh"],
            params["enc_bi"], params["enc_bh"],
            params["dec_emb_wi"], params["dec_wh"],
            params["dec_bi"], params["dec_bh"],
            params["out_w_pad"], params["out_b_pad"])
    return pl.pallas_call(
        _seq2seq_kernel,
        out_shape=(jax.ShapeDtypeStruct((TB_PAD, VP), jnp.float32),
                   jax.ShapeDtypeStruct((B, H), jnp.float32)),
        in_specs=[_full_spec(a) for a in args],
        out_specs=(pl.BlockSpec((TB_PAD, VP), lambda: (0, 0)),
                   pl.BlockSpec((B, H), lambda: (0, 0))),
    )(*args)


# ----------------------------- parameter init ------------------------------
def _init_gru_params(key, in_dim, hid_dim):
    """PyTorch-style uniform(-1/sqrt(H), 1/sqrt(H)); gates concatenated (r,z,n)."""
    k = 1.0 / jnp.sqrt(jnp.float32(hid_dim))
    keys = jax.random.split(key, 12)
    u = lambda kk, shape: jax.random.uniform(kk, shape, jnp.float32, -k, k)
    wir, wiz, win = (u(keys[i], (in_dim, hid_dim)) for i in range(3))
    whr, whz, whn = (u(keys[i], (hid_dim, hid_dim)) for i in range(3, 6))
    bir, biz, bin_ = (u(keys[i], (1, hid_dim)) for i in range(6, 9))
    bhr, bhz, bhn = (u(keys[i], (1, hid_dim)) for i in range(9, 12))
    wi = jnp.concatenate([wir, wiz, win], axis=1)    # [in_dim, 3H]
    wh = jnp.concatenate([whr, whz, whn], axis=1)    # [H, 3H]
    bi = jnp.concatenate([bir, biz, bin_], axis=1)   # [1, 3H]
    bh = jnp.concatenate([bhr, bhz, bhn], axis=1)    # [1, 3H]
    return wi, wh, bi, bh


def init_params(key):
    ks = jax.random.split(key, 6)
    kscale = 1.0 / jnp.sqrt(jnp.float32(H))
    enc_emb = jax.random.normal(ks[0], (V, E), jnp.float32) * 0.1
    dec_emb = jax.random.normal(ks[2], (V, E), jnp.float32) * 0.1
    enc_wi, enc_wh, enc_bi, enc_bh = _init_gru_params(ks[1], E, H)
    dec_wi, dec_wh, dec_bi, dec_bh = _init_gru_params(ks[3], E, H)
    out_w = jax.random.uniform(ks[4], (H, V), jnp.float32, -kscale, kscale)
    out_b = jax.random.uniform(ks[5], (1, V), jnp.float32, -kscale, kscale)

    # Fold the embedding gather into the input gate projection once:
    #   (emb padded to VP rows with zeros) @ W_i  -> [VP, 3H]
    enc_emb_pad = jnp.zeros((VP, E), jnp.float32).at[:V].set(enc_emb)
    dec_emb_pad = jnp.zeros((VP, E), jnp.float32).at[:V].set(dec_emb)
    enc_emb_wi = enc_emb_pad @ enc_wi                 # [VP, 3H]
    dec_emb_wi = dec_emb_pad @ dec_wi                 # [VP, 3H]

    # Lane-dense padded vocab projection: zero weights / -1e30 bias in pads.
    out_w_pad = jnp.zeros((H, VP), jnp.float32).at[:, :V].set(out_w)
    out_b_pad = jnp.full((1, VP), NEG_BIG, jnp.float32).at[:, :V].set(out_b)

    return {
        "enc_emb_wi": enc_emb_wi, "enc_wh": enc_wh,
        "enc_bi": enc_bi, "enc_bh": enc_bh,
        "dec_emb_wi": dec_emb_wi, "dec_wh": dec_wh,
        "dec_bi": dec_bi, "dec_bh": dec_bh,
        "out_w_pad": out_w_pad, "out_b_pad": out_b_pad,
    }


# ----------------------------- forward pass --------------------------------
@jax.jit
def _forward_core(params, input_seq, lengths_inputs):
    """Single fused kernel -> ([T,B,V] logits, [num_layers,B,H] hidden)."""
    bsz = input_seq.shape[0]
    # Step-major token ids [S*B, 1]; the actual embedding gather + input gate
    # projection happen inside the kernel as a one-hot matmul.
    tokens_sb = jnp.transpose(input_seq.astype(jnp.int32), (1, 0)).reshape(S * bsz, 1)
    lengths_2d = lengths_inputs.astype(jnp.int32)[:, None]            # [B,1]
    logits_slab, h_dec = fused_seq2seq(lengths_2d, tokens_sb, params)
    logits = logits_slab[:T * bsz].reshape(T, bsz, VP)[:, :, :V]      # [T,B,V]
    return logits, h_dec[None]                                        # [1,B,H]


def encoder_decoder_forward(params, input_seq, lengths_inputs, target_seq):
    """Mirrors EncoderDecoder.forward with teacher_forcing_ratio=0 (greedy).

    Returns (list of per-step [B,V] raw decoder logits, final hidden [1,B,H]);
    the reference appends decoder_output *before* log_softmax, and greedy
    feedback via argmax(log_softmax) == argmax(logits).
    """
    del target_seq  # only consumed on the teacher-forcing branch (ratio == 0)
    logits_tbv, hidden = _forward_core(params, input_seq, lengths_inputs)
    # Per-step list built outside the jitted core (API parity with PyTorch).
    return [logits_tbv[t] for t in range(MAX_TARGET_LEN)], hidden


# ----------------------------- driver ---------------------------------------
if __name__ == "__main__":
    key = jax.random.PRNGKey(0)
    pkey, dkey = jax.random.split(key)
    params = init_params(pkey)

    k1, k2 = jax.random.split(dkey)
    input_seq = jax.random.randint(k1, (B, S), 0, V, dtype=jnp.int32)
    lengths_inputs = jnp.array([S, S - 3], dtype=jnp.int32)
    target_seq = jax.random.randint(k2, (B, MAX_TARGET_LEN), 0, V, dtype=jnp.int32)

    outputs, dec_hidden = encoder_decoder_forward(
        params, input_seq, lengths_inputs, target_seq)
    outputs = [jax.block_until_ready(o) for o in outputs]
    dec_hidden = jax.block_until_ready(dec_hidden)

    assert len(outputs) == MAX_TARGET_LEN
    assert outputs[0].shape == (B, V)
    assert dec_hidden.shape == (NUM_LAYERS, B, H)
    assert all(bool(jnp.all(jnp.isfinite(o))) for o in outputs)
    print("KERNEL_OK")
</pallas_src>

<mosaic_0001>
module attributes {stable_mosaic.version = 11 : i64} {
  func.func @_seq2seq_kernel(%arg0: memref<2x1xi32, #tpu.memory_space<vmem>>, %arg1: memref<16x1xi32, #tpu.memory_space<vmem>>, %arg2: memref<128x96xf32, #tpu.memory_space<vmem>>, %arg3: memref<32x96xf32, #tpu.memory_space<vmem>>, %arg4: memref<1x96xf32, #tpu.memory_space<vmem>>, %arg5: memref<1x96xf32, #tpu.memory_space<vmem>>, %arg6: memref<128x96xf32, #tpu.memory_space<vmem>>, %arg7: memref<32x96xf32, #tpu.memory_space<vmem>>, %arg8: memref<1x96xf32, #tpu.memory_space<vmem>>, %arg9: memref<1x96xf32, #tpu.memory_space<vmem>>, %arg10: memref<32x128xf32, #tpu.memory_space<vmem>>, %arg11: memref<1x128xf32, #tpu.memory_space<vmem>>, %arg12: memref<16x128xf32, #tpu.memory_space<vmem>>, %arg13: memref<2x32xf32, #tpu.memory_space<vmem>>) attributes {dimension_semantics = [], scalar_prefetch = 0 : i64, scratch_operands = 0 : i64, tpu.core_type = #tpu.core_type<tc>} {
    %c0 = arith.constant 0 : index
    %c0_0 = arith.constant 0 : index
    %0 = vector.load %arg0[%c0, %c0_0] : memref<2x1xi32, #tpu.memory_space<vmem>>, vector<2x1xi32>
    %c0_1 = arith.constant 0 : index
    %c0_2 = arith.constant 0 : index
    %1 = vector.load %arg1[%c0_1, %c0_2] : memref<16x1xi32, #tpu.memory_space<vmem>>, vector<16x1xi32>
    %2 = tpu.iota {dimensions = array<i32: 1>} : vector<16x128xi32>
    %3 = vector.broadcast %1 : vector<16x1xi32> to vector<16x128xi32>
    %4 = arith.cmpi eq, %2, %3 : vector<16x128xi32>
    %5 = arith.extui %4 : vector<16x128xi1> to vector<16x128xi32>
    %6 = arith.sitofp %5 : vector<16x128xi32> to vector<16x128xf32>
    %c0_3 = arith.constant 0 : index
    %c0_4 = arith.constant 0 : index
    %7 = vector.load %arg2[%c0_3, %c0_4] : memref<128x96xf32, #tpu.memory_space<vmem>>, vector<128x96xf32>
    %cst = arith.constant dense<0.000000e+00> : vector<16x96xf32>
    %8 = tpu.matmul %6, %7, %cst {dimension_numbers = #tpu.dot_dimension_numbers<[1], [0], [0], [1], [0, 0, 1, 1], [], []>} : vector<16x128xf32>, vector<128x96xf32>, vector<16x96xf32> -> vector<16x96xf32>
    %c0_5 = arith.constant 0 : index
    %c0_6 = arith.constant 0 : index
    %9 = vector.load %arg4[%c0_5, %c0_6] : memref<1x96xf32, #tpu.memory_space<vmem>>, vector<1x96xf32>
    %10 = vector.shape_cast %9 : vector<1x96xf32> to vector<1x96xf32>
    %11 = vector.broadcast %10 : vector<1x96xf32> to vector<16x96xf32>
    %12 = arith.addf %8, %11 : vector<16x96xf32>
    %c0_7 = arith.constant 0 : index
    %c0_8 = arith.constant 0 : index
    %13 = vector.load %arg3[%c0_7, %c0_8] : memref<32x96xf32, #tpu.memory_space<vmem>>, vector<32x96xf32>
    %c0_9 = arith.constant 0 : index
    %c0_10 = arith.constant 0 : index
    %14 = vector.load %arg5[%c0_9, %c0_10] : memref<1x96xf32, #tpu.memory_space<vmem>>, vector<1x96xf32>
    %15 = vector.shape_cast %14 : vector<1x96xf32> to vector<1x96xf32>
    %16 = vector.broadcast %15 : vector<1x96xf32> to vector<2x96xf32>
    %cst_11 = arith.constant 0.000000e+00 : f32
    %17 = vector.broadcast %cst_11 : f32 to vector<2x32xf32>
    %18 = vector.extract_strided_slice %12 {offsets = [0, 0], sizes = [2, 96], strides = [1, 1]} : vector<16x96xf32> to vector<2x96xf32>
    %cst_12 = arith.constant dense<0.000000e+00> : vector<2x96xf32>
    %19 = tpu.matmul %17, %13, %cst_12 {dimension_numbers = #tpu.dot_dimension_numbers<[1], [0], [0], [1], [0, 0, 1, 1], [], []>} : vector<2x32xf32>, vector<32x96xf32>, vector<2x96xf32> -> vector<2x96xf32>
    %20 = arith.addf %19, %16 : vector<2x96xf32>
    %21 = vector.extract_strided_slice %18 {offsets = [0, 0], sizes = [2, 32], strides = [1, 1]} : vector<2x96xf32> to vector<2x32xf32>
    %22 = vector.extract_strided_slice %20 {offsets = [0, 0], sizes = [2, 32], strides = [1, 1]} : vector<2x96xf32> to vector<2x32xf32>
    %23 = arith.addf %21, %22 : vector<2x32xf32>
    %24 = arith.negf %23 : vector<2x32xf32>
    %25 = math.exp %24 : vector<2x32xf32>
    %cst_13 = arith.constant 1.000000e+00 : f32
    %26 = vector.broadcast %cst_13 : f32 to vector<2x32xf32>
    %27 = arith.addf %26, %25 : vector<2x32xf32>
    %28 = arith.divf %26, %27 : vector<2x32xf32>
    %29 = vector.extract_strided_slice %18 {offsets = [0, 32], sizes = [2, 32], strides = [1, 1]} : vector<2x96xf32> to vector<2x32xf32>
    %30 = vector.extract_strided_slice %20 {offsets = [0, 32], sizes = [2, 32], strides = [1, 1]} : vector<2x96xf32> to vector<2x32xf32>
    %31 = arith.addf %29, %30 : vector<2x32xf32>
    %32 = arith.negf %31 : vector<2x32xf32>
    %33 = math.exp %32 : vector<2x32xf32>
    %cst_14 = arith.constant 1.000000e+00 : f32
    %34 = vector.broadcast %cst_14 : f32 to vector<2x32xf32>
    %35 = arith.addf %34, %33 : vector<2x32xf32>
    %36 = arith.divf %34, %35 : vector<2x32xf32>
    %37 = vector.extract_strided_slice %18 {offsets = [0, 64], sizes = [2, 32], strides = [1, 1]} : vector<2x96xf32> to vector<2x32xf32>
    %38 = vector.extract_strided_slice %20 {offsets = [0, 64], sizes = [2, 32], strides = [1, 1]} : vector<2x96xf32> to vector<2x32xf32>
    %39 = arith.mulf %28, %38 : vector<2x32xf32>
    %40 = arith.addf %37, %39 : vector<2x32xf32>
    %41 = math.tanh %40 : vector<2x32xf32>
    %cst_15 = arith.constant 1.000000e+00 : f32
    %42 = vector.broadcast %cst_15 : f32 to vector<2x32xf32>
    %43 = arith.subf %42, %36 : vector<2x32xf32>
    %44 = arith.mulf %43, %41 : vector<2x32xf32>
    %45 = arith.mulf %36, %17 : vector<2x32xf32>
    %46 = arith.addf %44, %45 : vector<2x32xf32>
    %c0_i32 = arith.constant 0 : i32
    %47 = vector.broadcast %c0_i32 : i32 to vector<2x1xi32>
    %48 = arith.cmpi sgt, %0, %47 : vector<2x1xi32>
    %49 = vector.shape_cast %48 : vector<2x1xi1> to vector<2x1xi1>
    %50 = vector.broadcast %49 : vector<2x1xi1> to vector<2x32xi1>
    %51 = arith.select %50, %46, %17 : vector<2x32xi1>, vector<2x32xf32>
    %52 = vector.extract_strided_slice %12 {offsets = [2, 0], sizes = [2, 96], strides = [1, 1]} : vector<16x96xf32> to vector<2x96xf32>
    %cst_16 = arith.constant dense<0.000000e+00> : vector<2x96xf32>
    %53 = tpu.matmul %51, %13, %cst_16 {dimension_numbers = #tpu.dot_dimension_numbers<[1], [0], [0], [1], [0, 0, 1, 1], [], []>} : vector<2x32xf32>, vector<32x96xf32>, vector<2x96xf32> -> vector<2x96xf32>
    %54 = arith.addf %53, %16 : vector<2x96xf32>
    %55 = vector.extract_strided_slice %52 {offsets = [0, 0], sizes = [2, 32], strides = [1, 1]} : vector<2x96xf32> to vector<2x32xf32>
    %56 = vector.extract_strided_slice %54 {offsets = [0, 0], sizes = [2, 32], strides = [1, 1]} : vector<2x96xf32> to vector<2x32xf32>
    %57 = arith.addf %55, %56 : vector<2x32xf32>
    %58 = arith.negf %57 : vector<2x32xf32>
    %59 = math.exp %58 : vector<2x32xf32>
    %cst_17 = arith.constant 1.000000e+00 : f32
    %60 = vector.broadcast %cst_17 : f32 to vector<2x32xf32>
    %61 = arith.addf %60, %59 : vector<2x32xf32>
    %62 = arith.divf %60, %61 : vector<2x32xf32>
    %63 = vector.extract_strided_slice %52 {offsets = [0, 32], sizes = [2, 32], strides = [1, 1]} : vector<2x96xf32> to vector<2x32xf32>
    %64 = vector.extract_strided_slice %54 {offsets = [0, 32], sizes = [2, 32], strides = [1, 1]} : vector<2x96xf32> to vector<2x32xf32>
    %65 = arith.addf %63, %64 : vector<2x32xf32>
    %66 = arith.negf %65 : vector<2x32xf32>
    %67 = math.exp %66 : vector<2x32xf32>
    %cst_18 = arith.constant 1.000000e+00 : f32
    %68 = vector.broadcast %cst_18 : f32 to vector<2x32xf32>
    %69 = arith.addf %68, %67 : vector<2x32xf32>
    %70 = arith.divf %68, %69 : vector<2x32xf32>
    %71 = vector.extract_strided_slice %52 {offsets = [0, 64], sizes = [2, 32], strides = [1, 1]} : vector<2x96xf32> to vector<2x32xf32>
    %72 = vector.extract_strided_slice %54 {offsets = [0, 64], sizes = [2, 32], strides = [1, 1]} : vector<2x96xf32> to vector<2x32xf32>
    %73 = arith.mulf %62, %72 : vector<2x32xf32>
    %74 = arith.addf %71, %73 : vector<2x32xf32>
    %75 = math.tanh %74 : vector<2x32xf32>
    %cst_19 = arith.constant 1.000000e+00 : f32
    %76 = vector.broadcast %cst_19 : f32 to vector<2x32xf32>
    %77 = arith.subf %76, %70 : vector<2x32xf32>
    %78 = arith.mulf %77, %75 : vector<2x32xf32>
    %79 = arith.mulf %70, %51 : vector<2x32xf32>
    %80 = arith.addf %78, %79 : vector<2x32xf32>
    %c1_i32 = arith.constant 1 : i32
    %81 = vector.broadcast %c1_i32 : i32 to vector<2x1xi32>
    %82 = arith.cmpi sgt, %0, %81 : vector<2x1xi32>
    %83 = vector.shape_cast %82 : vector<2x1xi1> to vector<2x1xi1>
    %84 = vector.broadcast %83 : vector<2x1xi1> to vector<2x32xi1>
    %85 = arith.select %84, %80, %51 : vector<2x32xi1>, vector<2x32xf32>
    %86 = vector.extract_strided_slice %12 {offsets = [4, 0], sizes = [2, 96], strides = [1, 1]} : vector<16x96xf32> to vector<2x96xf32>
    %cst_20 = arith.constant dense<0.000000e+00> : vector<2x96xf32>
    %87 = tpu.matmul %85, %13, %cst_20 {dimension_numbers = #tpu.dot_dimension_numbers<[1], [0], [0], [1], [0, 0, 1, 1], [], []>} : vector<2x32xf32>, vector<32x96xf32>, vector<2x96xf32> -> vector<2x96xf32>
    %88 = arith.addf %87, %16 : vector<2x96xf32>
    %89 = vector.extract_strided_slice %86 {offsets = [0, 0], sizes = [2, 32], strides = [1, 1]} : vector<2x96xf32> to vector<2x32xf32>
    %90 = vector.extract_strided_slice %88 {offsets = [0, 0], sizes = [2, 32], strides = [1, 1]} : vector<2x96xf32> to vector<2x32xf32>
    %91 = arith.addf %89, %90 : vector<2x32xf32>
    %92 = arith.negf %91 : vector<2x32xf32>
    %93 = math.exp %92 : vector<2x32xf32>
    %cst_21 = arith.constant 1.000000e+00 : f32
    %94 = vector.broadcast %cst_21 : f32 to vector<2x32xf32>
    %95 = arith.addf %94, %93 : vector<2x32xf32>
    %96 = arith.divf %94, %95 : vector<2x32xf32>
    %97 = vector.extract_strided_slice %86 {offsets = [0, 32], sizes = [2, 32], strides = [1, 1]} : vector<2x96xf32> to vector<2x32xf32>
    %98 = vector.extract_strided_slice %88 {offsets = [0, 32], sizes = [2, 32], strides = [1, 1]} : vector<2x96xf32> to vector<2x32xf32>
    %99 = arith.addf %97, %98 : vector<2x32xf32>
    %100 = arith.negf %99 : vector<2x32xf32>
    %101 = math.exp %100 : vector<2x32xf32>
    %cst_22 = arith.constant 1.000000e+00 : f32
    %102 = vector.broadcast %cst_22 : f32 to vector<2x32xf32>
    %103 = arith.addf %102, %101 : vector<2x32xf32>
    %104 = arith.divf %102, %103 : vector<2x32xf32>
    %105 = vector.extract_strided_slice %86 {offsets = [0, 64], sizes = [2, 32], strides = [1, 1]} : vector<2x96xf32> to vector<2x32xf32>
    %106 = vector.extract_strided_slice %88 {offsets = [0, 64], sizes = [2, 32], strides = [1, 1]} : vector<2x96xf32> to vector<2x32xf32>
    %107 = arith.mulf %96, %106 : vector<2x32xf32>
    %108 = arith.addf %105, %107 : vector<2x32xf32>
    %109 = math.tanh %108 : vector<2x32xf32>
    %cst_23 = arith.constant 1.000000e+00 : f32
    %110 = vector.broadcast %cst_23 : f32 to vector<2x32xf32>
    %111 = arith.subf %110, %104 : vector<2x32xf32>
    %112 = arith.mulf %111, %109 : vector<2x32xf32>
    %113 = arith.mulf %104, %85 : vector<2x32xf32>
    %114 = arith.addf %112, %113 : vector<2x32xf32>
    %c2_i32 = arith.constant 2 : i32
    %115 = vector.broadcast %c2_i32 : i32 to vector<2x1xi32>
    %116 = arith.cmpi sgt, %0, %115 : vector<2x1xi32>
    %117 = vector.shape_cast %116 : vector<2x1xi1> to vector<2x1xi1>
    %118 = vector.broadcast %117 : vector<2x1xi1> to vector<2x32xi1>
    %119 = arith.select %118, %114, %85 : vector<2x32xi1>, vector<2x32xf32>
    %120 = vector.extract_strided_slice %12 {offsets = [6, 0], sizes = [2, 96], strides = [1, 1]} : vector<16x96xf32> to vector<2x96xf32>
    %cst_24 = arith.constant dense<0.000000e+00> : vector<2x96xf32>
    %121 = tpu.matmul %119, %13, %cst_24 {dimension_numbers = #tpu.dot_dimension_numbers<[1], [0], [0], [1], [0, 0, 1, 1], [], []>} : vector<2x32xf32>, vector<32x96xf32>, vector<2x96xf32> -> vector<2x96xf32>
    %122 = arith.addf %121, %16 : vector<2x96xf32>
    %123 = vector.extract_strided_slice %120 {offsets = [0, 0], sizes = [2, 32], strides = [1, 1]} : vector<2x96xf32> to vector<2x32xf32>
    %124 = vector.extract_strided_slice %122 {offsets = [0, 0], sizes = [2, 32], strides = [1, 1]} : vector<2x96xf32> to vector<2x32xf32>
    %125 = arith.addf %123, %124 : vector<2x32xf32>
    %126 = arith.negf %125 : vector<2x32xf32>
    %127 = math.exp %126 : vector<2x32xf32>
    %cst_25 = arith.constant 1.000000e+00 : f32
    %128 = vector.broadcast %cst_25 : f32 to vector<2x32xf32>
    %129 = arith.addf %128, %127 : vector<2x32xf32>
    %130 = arith.divf %128, %129 : vector<2x32xf32>
    %131 = vector.extract_strided_slice %120 {offsets = [0, 32], sizes = [2, 32], strides = [1, 1]} : vector<2x96xf32> to vector<2x32xf32>
    %132 = vector.extract_strided_slice %122 {offsets = [0, 32], sizes = [2, 32], strides = [1, 1]} : vector<2x96xf32> to vector<2x32xf32>
    %133 = arith.addf %131, %132 : vector<2x32xf32>
    %134 = arith.negf %133 : vector<2x32xf32>
    %135 = math.exp %134 : vector<2x32xf32>
    %cst_26 = arith.constant 1.000000e+00 : f32
    %136 = vector.broadcast %cst_26 : f32 to vector<2x32xf32>
    %137 = arith.addf %136, %135 : vector<2x32xf32>
    %138 = arith.divf %136, %137 : vector<2x32xf32>
    %139 = vector.extract_strided_slice %120 {offsets = [0, 64], sizes = [2, 32], strides = [1, 1]} : vector<2x96xf32> to vector<2x32xf32>
    %140 = vector.extract_strided_slice %122 {offsets = [0, 64], sizes = [2, 32], strides = [1, 1]} : vector<2x96xf32> to vector<2x32xf32>
    %141 = arith.mulf %130, %140 : vector<2x32xf32>
    %142 = arith.addf %139, %141 : vector<2x32xf32>
    %143 = math.tanh %142 : vector<2x32xf32>
    %cst_27 = arith.constant 1.000000e+00 : f32
    %144 = vector.broadcast %cst_27 : f32 to vector<2x32xf32>
    %145 = arith.subf %144, %138 : vector<2x32xf32>
    %146 = arith.mulf %145, %143 : vector<2x32xf32>
    %147 = arith.mulf %138, %119 : vector<2x32xf32>
    %148 = arith.addf %146, %147 : vector<2x32xf32>
    %c3_i32 = arith.constant 3 : i32
    %149 = vector.broadcast %c3_i32 : i32 to vector<2x1xi32>
    %150 = arith.cmpi sgt, %0, %149 : vector<2x1xi32>
    %151 = vector.shape_cast %150 : vector<2x1xi1> to vector<2x1xi1>
    %152 = vector.broadcast %151 : vector<2x1xi1> to vector<2x32xi1>
    %153 = arith.select %152, %148, %119 : vector<2x32xi1>, vector<2x32xf32>
    %154 = vector.extract_strided_slice %12 {offsets = [8, 0], sizes = [2, 96], strides = [1, 1]} : vector<16x96xf32> to vector<2x96xf32>
    %cst_28 = arith.constant dense<0.000000e+00> : vector<2x96xf32>
    %155 = tpu.matmul %153, %13, %cst_28 {dimension_numbers = #tpu.dot_dimension_numbers<[1], [0], [0], [1], [0, 0, 1, 1], [], []>} : vector<2x32xf32>, vector<32x96xf32>, vector<2x96xf32> -> vector<2x96xf32>
    %156 = arith.addf %155, %16 : vector<2x96xf32>
    %157 = vector.extract_strided_slice %154 {offsets = [0, 0], sizes = [2, 32], strides = [1, 1]} : vector<2x96xf32> to vector<2x32xf32>
    %158 = vector.extract_strided_slice %156 {offsets = [0, 0], sizes = [2, 32], strides = [1, 1]} : vector<2x96xf32> to vector<2x32xf32>
    %159 = arith.addf %157, %158 : vector<2x32xf32>
    %160 = arith.negf %159 : vector<2x32xf32>
    %161 = math.exp %160 : vector<2x32xf32>
    %cst_29 = arith.constant 1.000000e+00 : f32
    %162 = vector.broadcast %cst_29 : f32 to vector<2x32xf32>
    %163 = arith.addf %162, %161 : vector<2x32xf32>
    %164 = arith.divf %162, %163 : vector<2x32xf32>
    %165 = vector.extract_strided_slice %154 {offsets = [0, 32], sizes = [2, 32], strides = [1, 1]} : vector<2x96xf32> to vector<2x32xf32>
    %166 = vector.extract_strided_slice %156 {offsets = [0, 32], sizes = [2, 32], strides = [1, 1]} : vector<2x96xf32> to vector<2x32xf32>
    %167 = arith.addf %165, %166 : vector<2x32xf32>
    %168 = arith.negf %167 : vector<2x32xf32>
    %169 = math.exp %168 : vector<2x32xf32>
    %cst_30 = arith.constant 1.000000e+00 : f32
    %170 = vector.broadcast %cst_30 : f32 to vector<2x32xf32>
    %171 = arith.addf %170, %169 : vector<2x32xf32>
    %172 = arith.divf %170, %171 : vector<2x32xf32>
    %173 = vector.extract_strided_slice %154 {offsets = [0, 64], sizes = [2, 32], strides = [1, 1]} : vector<2x96xf32> to vector<2x32xf32>
    %174 = vector.extract_strided_slice %156 {offsets = [0, 64], sizes = [2, 32], strides = [1, 1]} : vector<2x96xf32> to vector<2x32xf32>
    %175 = arith.mulf %164, %174 : vector<2x32xf32>
    %176 = arith.addf %173, %175 : vector<2x32xf32>
    %177 = math.tanh %176 : vector<2x32xf32>
    %cst_31 = arith.constant 1.000000e+00 : f32
    %178 = vector.broadcast %cst_31 : f32 to vector<2x32xf32>
    %179 = arith.subf %178, %172 : vector<2x32xf32>
    %180 = arith.mulf %179, %177 : vector<2x32xf32>
    %181 = arith.mulf %172, %153 : vector<2x32xf32>
    %182 = arith.addf %180, %181 : vector<2x32xf32>
    %c4_i32 = arith.constant 4 : i32
    %183 = vector.broadcast %c4_i32 : i32 to vector<2x1xi32>
    %184 = arith.cmpi sgt, %0, %183 : vector<2x1xi32>
    %185 = vector.shape_cast %184 : vector<2x1xi1> to vector<2x1xi1>
    %186 = vector.broadcast %185 : vector<2x1xi1> to vector<2x32xi1>
    %187 = arith.select %186, %182, %153 : vector<2x32xi1>, vector<2x32xf32>
    %188 = vector.extract_strided_slice %12 {offsets = [10, 0], sizes = [2, 96], strides = [1, 1]} : vector<16x96xf32> to vector<2x96xf32>
    %cst_32 = arith.constant dense<0.000000e+00> : vector<2x96xf32>
    %189 = tpu.matmul %187, %13, %cst_32 {dimension_numbers = #tpu.dot_dimension_numbers<[1], [0], [0], [1], [0, 0, 1, 1], [], []>} : vector<2x32xf32>, vector<32x96xf32>, vector<2x96xf32> -> vector<2x96xf32>
    %190 = arith.addf %189, %16 : vector<2x96xf32>
    %191 = vector.extract_strided_slice %188 {offsets = [0, 0], sizes = [2, 32], strides = [1, 1]} : vector<2x96xf32> to vector<2x32xf32>
    %192 = vector.extract_strided_slice %190 {offsets = [0, 0], sizes = [2, 32], strides = [1, 1]} : vector<2x96xf32> to vector<2x32xf32>
    %193 = arith.addf %191, %192 : vector<2x32xf32>
    %194 = arith.negf %193 : vector<2x32xf32>
    %195 = math.exp %194 : vector<2x32xf32>
    %cst_33 = arith.constant 1.000000e+00 : f32
    %196 = vector.broadcast %cst_33 : f32 to vector<2x32xf32>
    %197 = arith.addf %196, %195 : vector<2x32xf32>
    %198 = arith.divf %196, %197 : vector<2x32xf32>
    %199 = vector.extract_strided_slice %188 {offsets = [0, 32], sizes = [2, 32], strides = [1, 1]} : vector<2x96xf32> to vector<2x32xf32>
    %200 = vector.extract_strided_slice %190 {offsets = [0, 32], sizes = [2, 32], strides = [1, 1]} : vector<2x96xf32> to vector<2x32xf32>
    %201 = arith.addf %199, %200 : vector<2x32xf32>
    %202 = arith.negf %201 : vector<2x32xf32>
    %203 = math.exp %202 : vector<2x32xf32>
    %cst_34 = arith.constant 1.000000e+00 : f32
    %204 = vector.broadcast %cst_34 : f32 to vector<2x32xf32>
    %205 = arith.addf %204, %203 : vector<2x32xf32>
    %206 = arith.divf %204, %205 : vector<2x32xf32>
    %207 = vector.extract_strided_slice %188 {offsets = [0, 64], sizes = [2, 32], strides = [1, 1]} : vector<2x96xf32> to vector<2x32xf32>
    %208 = vector.extract_strided_slice %190 {offsets = [0, 64], sizes = [2, 32], strides = [1, 1]} : vector<2x96xf32> to vector<2x32xf32>
    %209 = arith.mulf %198, %208 : vector<2x32xf32>
    %210 = arith.addf %207, %209 : vector<2x32xf32>
    %211 = math.tanh %210 : vector<2x32xf32>
    %cst_35 = arith.constant 1.000000e+00 : f32
    %212 = vector.broadcast %cst_35 : f32 to vector<2x32xf32>
    %213 = arith.subf %212, %206 : vector<2x32xf32>
    %214 = arith.mulf %213, %211 : vector<2x32xf32>
    %215 = arith.mulf %206, %187 : vector<2x32xf32>
    %216 = arith.addf %214, %215 : vector<2x32xf32>
    %c5_i32 = arith.constant 5 : i32
    %217 = vector.broadcast %c5_i32 : i32 to vector<2x1xi32>
    %218 = arith.cmpi sgt, %0, %217 : vector<2x1xi32>
    %219 = vector.shape_cast %218 : vector<2x1xi1> to vector<2x1xi1>
    %220 = vector.broadcast %219 : vector<2x1xi1> to vector<2x32xi1>
    %221 = arith.select %220, %216, %187 : vector<2x32xi1>, vector<2x32xf32>
    %222 = vector.extract_strided_slice %12 {offsets = [12, 0], sizes = [2, 96], strides = [1, 1]} : vector<16x96xf32> to vector<2x96xf32>
    %cst_36 = arith.constant dense<0.000000e+00> : vector<2x96xf32>
    %223 = tpu.matmul %221, %13, %cst_36 {dimension_numbers = #tpu.dot_dimension_numbers<[1], [0], [0], [1], [0, 0, 1, 1], [], []>} : vector<2x32xf32>, vector<32x96xf32>, vector<2x96xf32> -> vector<2x96xf32>
    %224 = arith.addf %223, %16 : vector<2x96xf32>
    %225 = vector.extract_strided_slice %222 {offsets = [0, 0], sizes = [2, 32], strides = [1, 1]} : vector<2x96xf32> to vector<2x32xf32>
    %226 = vector.extract_strided_slice %224 {offsets = [0, 0], sizes = [2, 32], strides = [1, 1]} : vector<2x96xf32> to vector<2x32xf32>
    %227 = arith.addf %225, %226 : vector<2x32xf32>
    %228 = arith.negf %227 : vector<2x32xf32>
    %229 = math.exp %228 : vector<2x32xf32>
    %cst_37 = arith.constant 1.000000e+00 : f32
    %230 = vector.broadcast %cst_37 : f32 to vector<2x32xf32>
    %231 = arith.addf %230, %229 : vector<2x32xf32>
    %232 = arith.divf %230, %231 : vector<2x32xf32>
    %233 = vector.extract_strided_slice %222 {offsets = [0, 32], sizes = [2, 32], strides = [1, 1]} : vector<2x96xf32> to vector<2x32xf32>
    %234 = vector.extract_strided_slice %224 {offsets = [0, 32], sizes = [2, 32], strides = [1, 1]} : vector<2x96xf32> to vector<2x32xf32>
    %235 = arith.addf %233, %234 : vector<2x32xf32>
    %236 = arith.negf %235 : vector<2x32xf32>
    %237 = math.exp %236 : vector<2x32xf32>
    %cst_38 = arith.constant 1.000000e+00 : f32
    %238 = vector.broadcast %cst_38 : f32 to vector<2x32xf32>
    %239 = arith.addf %238, %237 : vector<2x32xf32>
    %240 = arith.divf %238, %239 : vector<2x32xf32>
    %241 = vector.extract_strided_slice %222 {offsets = [0, 64], sizes = [2, 32], strides = [1, 1]} : vector<2x96xf32> to vector<2x32xf32>
    %242 = vector.extract_strided_slice %224 {offsets = [0, 64], sizes = [2, 32], strides = [1, 1]} : vector<2x96xf32> to vector<2x32xf32>
    %243 = arith.mulf %232, %242 : vector<2x32xf32>
    %244 = arith.addf %241, %243 : vector<2x32xf32>
    %245 = math.tanh %244 : vector<2x32xf32>
    %cst_39 = arith.constant 1.000000e+00 : f32
    %246 = vector.broadcast %cst_39 : f32 to vector<2x32xf32>
    %247 = arith.subf %246, %240 : vector<2x32xf32>
    %248 = arith.mulf %247, %245 : vector<2x32xf32>
    %249 = arith.mulf %240, %221 : vector<2x32xf32>
    %250 = arith.addf %248, %249 : vector<2x32xf32>
    %c6_i32 = arith.constant 6 : i32
    %251 = vector.broadcast %c6_i32 : i32 to vector<2x1xi32>
    %252 = arith.cmpi sgt, %0, %251 : vector<2x1xi32>
    %253 = vector.shape_cast %252 : vector<2x1xi1> to vector<2x1xi1>
    %254 = vector.broadcast %253 : vector<2x1xi1> to vector<2x32xi1>
    %255 = arith.select %254, %250, %221 : vector<2x32xi1>, vector<2x32xf32>
    %256 = vector.extract_strided_slice %12 {offsets = [14, 0], sizes = [2, 96], strides = [1, 1]} : vector<16x96xf32> to vector<2x96xf32>
    %cst_40 = arith.constant dense<0.000000e+00> : vector<2x96xf32>
    %257 = tpu.matmul %255, %13, %cst_40 {dimension_numbers = #tpu.dot_dimension_numbers<[1], [0], [0], [1], [0, 0, 1, 1], [], []>} : vector<2x32xf32>, vector<32x96xf32>, vector<2x96xf32> -> vector<2x96xf32>
    %258 = arith.addf %257, %16 : vector<2x96xf32>
    %259 = vector.extract_strided_slice %256 {offsets = [0, 0], sizes = [2, 32], strides = [1, 1]} : vector<2x96xf32> to vector<2x32xf32>
    %260 = vector.extract_strided_slice %258 {offsets = [0, 0], sizes = [2, 32], strides = [1, 1]} : vector<2x96xf32> to vector<2x32xf32>
    %261 = arith.addf %259, %260 : vector<2x32xf32>
    %262 = arith.negf %261 : vector<2x32xf32>
    %263 = math.exp %262 : vector<2x32xf32>
    %cst_41 = arith.constant 1.000000e+00 : f32
    %264 = vector.broadcast %cst_41 : f32 to vector<2x32xf32>
    %265 = arith.addf %264, %263 : vector<2x32xf32>
    %266 = arith.divf %264, %265 : vector<2x32xf32>
    %267 = vector.extract_strided_slice %256 {offsets = [0, 32], sizes = [2, 32], strides = [1, 1]} : vector<2x96xf32> to vector<2x32xf32>
    %268 = vector.extract_strided_slice %258 {offsets = [0, 32], sizes = [2, 32], strides = [1, 1]} : vector<2x96xf32> to vector<2x32xf32>
    %269 = arith.addf %267, %268 : vector<2x32xf32>
    %270 = arith.negf %269 : vector<2x32xf32>
    %271 = math.exp %270 : vector<2x32xf32>
    %cst_42 = arith.constant 1.000000e+00 : f32
    %272 = vector.broadcast %cst_42 : f32 to vector<2x32xf32>
    %273 = arith.addf %272, %271 : vector<2x32xf32>
    %274 = arith.divf %272, %273 : vector<2x32xf32>
    %275 = vector.extract_strided_slice %256 {offsets = [0, 64], sizes = [2, 32], strides = [1, 1]} : vector<2x96xf32> to vector<2x32xf32>
    %276 = vector.extract_strided_slice %258 {offsets = [0, 64], sizes = [2, 32], strides = [1, 1]} : vector<2x96xf32> to vector<2x32xf32>
    %277 = arith.mulf %266, %276 : vector<2x32xf32>
    %278 = arith.addf %275, %277 : vector<2x32xf32>
    %279 = math.tanh %278 : vector<2x32xf32>
    %cst_43 = arith.constant 1.000000e+00 : f32
    %280 = vector.broadcast %cst_43 : f32 to vector<2x32xf32>
    %281 = arith.subf %280, %274 : vector<2x32xf32>
    %282 = arith.mulf %281, %279 : vector<2x32xf32>
    %283 = arith.mulf %274, %255 : vector<2x32xf32>
    %284 = arith.addf %282, %283 : vector<2x32xf32>
    %c7_i32 = arith.constant 7 : i32
    %285 = vector.broadcast %c7_i32 : i32 to vector<2x1xi32>
    %286 = arith.cmpi sgt, %0, %285 : vector<2x1xi32>
    %287 = vector.shape_cast %286 : vector<2x1xi1> to vector<2x1xi1>
    %288 = vector.broadcast %287 : vector<2x1xi1> to vector<2x32xi1>
    %289 = arith.select %288, %284, %255 : vector<2x32xi1>, vector<2x32xf32>
    %c0_44 = arith.constant 0 : index
    %c0_45 = arith.constant 0 : index
    %290 = vector.load %arg6[%c0_44, %c0_45] : memref<128x96xf32, #tpu.memory_space<vmem>>, vector<128x96xf32>
    %c0_46 = arith.constant 0 : index
    %c0_47 = arith.constant 0 : index
    %291 = vector.load %arg7[%c0_46, %c0_47] : memref<32x96xf32, #tpu.memory_space<vmem>>, vector<32x96xf32>
    %c0_48 = arith.constant 0 : index
    %c0_49 = arith.constant 0 : index
    %292 = vector.load %arg10[%c0_48, %c0_49] : memref<32x128xf32, #tpu.memory_space<vmem>>, vector<32x128xf32>
    %c0_50 = arith.constant 0 : index
    %c0_51 = arith.constant 0 : index
    %293 = vector.load %arg8[%c0_50, %c0_51] : memref<1x96xf32, #tpu.memory_space<vmem>>, vector<1x96xf32>
    %294 = vector.shape_cast %293 : vector<1x96xf32> to vector<1x96xf32>
    %295 = vector.broadcast %294 : vector<1x96xf32> to vector<2x96xf32>
    %c0_52 = arith.constant 0 : index
    %c0_53 = arith.constant 0 : index
    %296 = vector.load %arg9[%c0_52, %c0_53] : memref<1x96xf32, #tpu.memory_space<vmem>>, vector<1x96xf32>
    %297 = vector.shape_cast %296 : vector<1x96xf32> to vector<1x96xf32>
    %298 = vector.broadcast %297 : vector<1x96xf32> to vector<2x96xf32>
    %c0_54 = arith.constant 0 : index
    %c0_55 = arith.constant 0 : index
    %299 = vector.load %arg11[%c0_54, %c0_55] : memref<1x128xf32, #tpu.memory_space<vmem>>, vector<1x128xf32>
    %300 = vector.shape_cast %299 : vector<1x128xf32> to vector<1x128xf32>
    %301 = vector.broadcast %300 : vector<1x128xf32> to vector<2x128xf32>
    %302 = tpu.iota {dimensions = array<i32: 1>} : vector<2x128xi32>
    %c1_i32_56 = arith.constant 1 : i32
    %303 = vector.broadcast %c1_i32_56 : i32 to vector<2x1xi32>
    %304 = vector.broadcast %303 : vector<2x1xi32> to vector<2x128xi32>
    %305 = arith.cmpi eq, %302, %304 : vector<2x128xi32>
    %306 = arith.extui %305 : vector<2x128xi1> to vector<2x128xi32>
    %307 = arith.sitofp %306 : vector<2x128xi32> to vector<2x128xf32>
    %cst_57 = arith.constant dense<0.000000e+00> : vector<2x96xf32>
    %308 = tpu.matmul %307, %290, %cst_57 {dimension_numbers = #tpu.dot_dimension_numbers<[1], [0], [0], [1], [0, 0, 1, 1], [], []>} : vector<2x128xf32>, vector<128x96xf32>, vector<2x96xf32> -> vector<2x96xf32>
    %309 = arith.addf %308, %295 : vector<2x96xf32>
    %cst_58 = arith.constant dense<0.000000e+00> : vector<2x96xf32>
    %310 = tpu.matmul %289, %291, %cst_58 {dimension_numbers = #tpu.dot_dimension_numbers<[1], [0], [0], [1], [0, 0, 1, 1], [], []>} : vector<2x32xf32>, vector<32x96xf32>, vector<2x96xf32> -> vector<2x96xf32>
    %311 = arith.addf %310, %298 : vector<2x96xf32>
    %312 = vector.extract_strided_slice %309 {offsets = [0, 0], sizes = [2, 32], strides = [1, 1]} : vector<2x96xf32> to vector<2x32xf32>
    %313 = vector.extract_strided_slice %311 {offsets = [0, 0], sizes = [2, 32], strides = [1, 1]} : vector<2x96xf32> to vector<2x32xf32>
    %314 = arith.addf %312, %313 : vector<2x32xf32>
    %315 = arith.negf %314 : vector<2x32xf32>
    %316 = math.exp %315 : vector<2x32xf32>
    %cst_59 = arith.constant 1.000000e+00 : f32
    %317 = vector.broadcast %cst_59 : f32 to vector<2x32xf32>
    %318 = arith.addf %317, %316 : vector<2x32xf32>
    %319 = arith.divf %317, %318 : vector<2x32xf32>
    %320 = vector.extract_strided_slice %309 {offsets = [0, 32], sizes = [2, 32], strides = [1, 1]} : vector<2x96xf32> to vector<2x32xf32>
    %321 = vector.extract_strided_slice %311 {offsets = [0, 32], sizes = [2, 32], strides = [1, 1]} : vector<2x96xf32> to vector<2x32xf32>
    %322 = arith.addf %320, %321 : vector<2x32xf32>
    %323 = arith.negf %322 : vector<2x32xf32>
    %324 = math.exp %323 : vector<2x32xf32>
    %cst_60 = arith.constant 1.000000e+00 : f32
    %325 = vector.broadcast %cst_60 : f32 to vector<2x32xf32>
    %326 = arith.addf %325, %324 : vector<2x32xf32>
    %327 = arith.divf %325, %326 : vector<2x32xf32>
    %328 = vector.extract_strided_slice %309 {offsets = [0, 64], sizes = [2, 32], strides = [1, 1]} : vector<2x96xf32> to vector<2x32xf32>
    %329 = vector.extract_strided_slice %311 {offsets = [0, 64], sizes = [2, 32], strides = [1, 1]} : vector<2x96xf32> to vector<2x32xf32>
    %330 = arith.mulf %319, %329 : vector<2x32xf32>
    %331 = arith.addf %328, %330 : vector<2x32xf32>
    %332 = math.tanh %331 : vector<2x32xf32>
    %cst_61 = arith.constant 1.000000e+00 : f32
    %333 = vector.broadcast %cst_61 : f32 to vector<2x32xf32>
    %334 = arith.subf %333, %327 : vector<2x32xf32>
    %335 = arith.mulf %334, %332 : vector<2x32xf32>
    %336 = arith.mulf %327, %289 : vector<2x32xf32>
    %337 = arith.addf %335, %336 : vector<2x32xf32>
    %cst_62 = arith.constant dense<0.000000e+00> : vector<2x128xf32>
    %338 = tpu.matmul %337, %292, %cst_62 {dimension_numbers = #tpu.dot_dimension_numbers<[1], [0], [0], [1], [0, 0, 1, 1], [], []>} : vector<2x32xf32>, vector<32x128xf32>, vector<2x128xf32> -> vector<2x128xf32>
    %339 = arith.addf %338, %301 : vector<2x128xf32>
    %cst_63 = arith.constant dense<0xFF800000> : vector<2xf32>
    %340 = vector.multi_reduction <maximumf>, %339, %cst_63 [1] : vector<2x128xf32> to vector<2xf32>
    %341 = vector.shape_cast %340 : vector<2xf32> to vector<2x1xf32>
    %342 = vector.broadcast %341 : vector<2x1xf32> to vector<2x128xf32>
    %343 = arith.cmpf oeq, %339, %342 : vector<2x128xf32>
    %c128_i32 = arith.constant 128 : i32
    %344 = vector.broadcast %c128_i32 : i32 to vector<2x128xi32>
    %345 = arith.select %343, %302, %344 : vector<2x128xi1>, vector<2x128xi32>
    %cst_64 = arith.constant dense<2147483647> : vector<2xi32>
    %346 = vector.multi_reduction <minsi>, %345, %cst_64 [1] : vector<2x128xi32> to vector<2xi32>
    %347 = vector.shape_cast %346 : vector<2xi32> to vector<2x1xi32>
    %348 = vector.broadcast %347 : vector<2x1xi32> to vector<2x128xi32>
    %349 = arith.cmpi eq, %302, %348 : vector<2x128xi32>
    %350 = arith.extui %349 : vector<2x128xi1> to vector<2x128xi32>
    %351 = arith.sitofp %350 : vector<2x128xi32> to vector<2x128xf32>
    %cst_65 = arith.constant dense<0.000000e+00> : vector<2x96xf32>
    %352 = tpu.matmul %351, %290, %cst_65 {dimension_numbers = #tpu.dot_dimension_numbers<[1], [0], [0], [1], [0, 0, 1, 1], [], []>} : vector<2x128xf32>, vector<128x96xf32>, vector<2x96xf32> -> vector<2x96xf32>
    %353 = arith.addf %352, %295 : vector<2x96xf32>
    %cst_66 = arith.constant dense<0.000000e+00> : vector<2x96xf32>
    %354 = tpu.matmul %337, %291, %cst_66 {dimension_numbers = #tpu.dot_dimension_numbers<[1], [0], [0], [1], [0, 0, 1, 1], [], []>} : vector<2x32xf32>, vector<32x96xf32>, vector<2x96xf32> -> vector<2x96xf32>
    %355 = arith.addf %354, %298 : vector<2x96xf32>
    %356 = vector.extract_strided_slice %353 {offsets = [0, 0], sizes = [2, 32], strides = [1, 1]} : vector<2x96xf32> to vector<2x32xf32>
    %357 = vector.extract_strided_slice %355 {offsets = [0, 0], sizes = [2, 32], strides = [1, 1]} : vector<2x96xf32> to vector<2x32xf32>
    %358 = arith.addf %356, %357 : vector<2x32xf32>
    %359 = arith.negf %358 : vector<2x32xf32>
    %360 = math.exp %359 : vector<2x32xf32>
    %cst_67 = arith.constant 1.000000e+00 : f32
    %361 = vector.broadcast %cst_67 : f32 to vector<2x32xf32>
    %362 = arith.addf %361, %360 : vector<2x32xf32>
    %363 = arith.divf %361, %362 : vector<2x32xf32>
    %364 = vector.extract_strided_slice %353 {offsets = [0, 32], sizes = [2, 32], strides = [1, 1]} : vector<2x96xf32> to vector<2x32xf32>
    %365 = vector.extract_strided_slice %355 {offsets = [0, 32], sizes = [2, 32], strides = [1, 1]} : vector<2x96xf32> to vector<2x32xf32>
    %366 = arith.addf %364, %365 : vector<2x32xf32>
    %367 = arith.negf %366 : vector<2x32xf32>
    %368 = math.exp %367 : vector<2x32xf32>
    %cst_68 = arith.constant 1.000000e+00 : f32
    %369 = vector.broadcast %cst_68 : f32 to vector<2x32xf32>
    %370 = arith.addf %369, %368 : vector<2x32xf32>
    %371 = arith.divf %369, %370 : vector<2x32xf32>
    %372 = vector.extract_strided_slice %353 {offsets = [0, 64], sizes = [2, 32], strides = [1, 1]} : vector<2x96xf32> to vector<2x32xf32>
    %373 = vector.extract_strided_slice %355 {offsets = [0, 64], sizes = [2, 32], strides = [1, 1]} : vector<2x96xf32> to vector<2x32xf32>
    %374 = arith.mulf %363, %373 : vector<2x32xf32>
    %375 = arith.addf %372, %374 : vector<2x32xf32>
    %376 = math.tanh %375 : vector<2x32xf32>
    %cst_69 = arith.constant 1.000000e+00 : f32
    %377 = vector.broadcast %cst_69 : f32 to vector<2x32xf32>
    %378 = arith.subf %377, %371 : vector<2x32xf32>
    %379 = arith.mulf %378, %376 : vector<2x32xf32>
    %380 = arith.mulf %371, %337 : vector<2x32xf32>
    %381 = arith.addf %379, %380 : vector<2x32xf32>
    %cst_70 = arith.constant dense<0.000000e+00> : vector<2x128xf32>
    %382 = tpu.matmul %381, %292, %cst_70 {dimension_numbers = #tpu.dot_dimension_numbers<[1], [0], [0], [1], [0, 0, 1, 1], [], []>} : vector<2x32xf32>, vector<32x128xf32>, vector<2x128xf32> -> vector<2x128xf32>
    %383 = arith.addf %382, %301 : vector<2x128xf32>
    %cst_71 = arith.constant dense<0xFF800000> : vector<2xf32>
    %384 = vector.multi_reduction <maximumf>, %383, %cst_71 [1] : vector<2x128xf32> to vector<2xf32>
    %385 = vector.shape_cast %384 : vector<2xf32> to vector<2x1xf32>
    %386 = vector.broadcast %385 : vector<2x1xf32> to vector<2x128xf32>
    %387 = arith.cmpf oeq, %383, %386 : vector<2x128xf32>
    %c128_i32_72 = arith.constant 128 : i32
    %388 = vector.broadcast %c128_i32_72 : i32 to vector<2x128xi32>
    %389 = arith.select %387, %302, %388 : vector<2x128xi1>, vector<2x128xi32>
    %cst_73 = arith.constant dense<2147483647> : vector<2xi32>
    %390 = vector.multi_reduction <minsi>, %389, %cst_73 [1] : vector<2x128xi32> to vector<2xi32>
    %391 = vector.shape_cast %390 : vector<2xi32> to vector<2x1xi32>
    %392 = vector.broadcast %391 : vector<2x1xi32> to vector<2x128xi32>
    %393 = arith.cmpi eq, %302, %392 : vector<2x128xi32>
    %394 = arith.extui %393 : vector<2x128xi1> to vector<2x128xi32>
    %395 = arith.sitofp %394 : vector<2x128xi32> to vector<2x128xf32>
    %cst_74 = arith.constant dense<0.000000e+00> : vector<2x96xf32>
    %396 = tpu.matmul %395, %290, %cst_74 {dimension_numbers = #tpu.dot_dimension_numbers<[1], [0], [0], [1], [0, 0, 1, 1], [], []>} : vector<2x128xf32>, vector<128x96xf32>, vector<2x96xf32> -> vector<2x96xf32>
    %397 = arith.addf %396, %295 : vector<2x96xf32>
    %cst_75 = arith.constant dense<0.000000e+00> : vector<2x96xf32>
    %398 = tpu.matmul %381, %291, %cst_75 {dimension_numbers = #tpu.dot_dimension_numbers<[1], [0], [0], [1], [0, 0, 1, 1], [], []>} : vector<2x32xf32>, vector<32x96xf32>, vector<2x96xf32> -> vector<2x96xf32>
    %399 = arith.addf %398, %298 : vector<2x96xf32>
    %400 = vector.extract_strided_slice %397 {offsets = [0, 0], sizes = [2, 32], strides = [1, 1]} : vector<2x96xf32> to vector<2x32xf32>
    %401 = vector.extract_strided_slice %399 {offsets = [0, 0], sizes = [2, 32], strides = [1, 1]} : vector<2x96xf32> to vector<2x32xf32>
    %402 = arith.addf %400, %401 : vector<2x32xf32>
    %403 = arith.negf %402 : vector<2x32xf32>
    %404 = math.exp %403 : vector<2x32xf32>
    %cst_76 = arith.constant 1.000000e+00 : f32
    %405 = vector.broadcast %cst_76 : f32 to vector<2x32xf32>
    %406 = arith.addf %405, %404 : vector<2x32xf32>
    %407 = arith.divf %405, %406 : vector<2x32xf32>
    %408 = vector.extract_strided_slice %397 {offsets = [0, 32], sizes = [2, 32], strides = [1, 1]} : vector<2x96xf32> to vector<2x32xf32>
    %409 = vector.extract_strided_slice %399 {offsets = [0, 32], sizes = [2, 32], strides = [1, 1]} : vector<2x96xf32> to vector<2x32xf32>
    %410 = arith.addf %408, %409 : vector<2x32xf32>
    %411 = arith.negf %410 : vector<2x32xf32>
    %412 = math.exp %411 : vector<2x32xf32>
    %cst_77 = arith.constant 1.000000e+00 : f32
    %413 = vector.broadcast %cst_77 : f32 to vector<2x32xf32>
    %414 = arith.addf %413, %412 : vector<2x32xf32>
    %415 = arith.divf %413, %414 : vector<2x32xf32>
    %416 = vector.extract_strided_slice %397 {offsets = [0, 64], sizes = [2, 32], strides = [1, 1]} : vector<2x96xf32> to vector<2x32xf32>
    %417 = vector.extract_strided_slice %399 {offsets = [0, 64], sizes = [2, 32], strides = [1, 1]} : vector<2x96xf32> to vector<2x32xf32>
    %418 = arith.mulf %407, %417 : vector<2x32xf32>
    %419 = arith.addf %416, %418 : vector<2x32xf32>
    %420 = math.tanh %419 : vector<2x32xf32>
    %cst_78 = arith.constant 1.000000e+00 : f32
    %421 = vector.broadcast %cst_78 : f32 to vector<2x32xf32>
    %422 = arith.subf %421, %415 : vector<2x32xf32>
    %423 = arith.mulf %422, %420 : vector<2x32xf32>
    %424 = arith.mulf %415, %381 : vector<2x32xf32>
    %425 = arith.addf %423, %424 : vector<2x32xf32>
    %cst_79 = arith.constant dense<0.000000e+00> : vector<2x128xf32>
    %426 = tpu.matmul %425, %292, %cst_79 {dimension_numbers = #tpu.dot_dimension_numbers<[1], [0], [0], [1], [0, 0, 1, 1], [], []>} : vector<2x32xf32>, vector<32x128xf32>, vector<2x128xf32> -> vector<2x128xf32>
    %427 = arith.addf %426, %301 : vector<2x128xf32>
    %cst_80 = arith.constant dense<0xFF800000> : vector<2xf32>
    %428 = vector.multi_reduction <maximumf>, %427, %cst_80 [1] : vector<2x128xf32> to vector<2xf32>
    %429 = vector.shape_cast %428 : vector<2xf32> to vector<2x1xf32>
    %430 = vector.broadcast %429 : vector<2x1xf32> to vector<2x128xf32>
    %431 = arith.cmpf oeq, %427, %430 : vector<2x128xf32>
    %c128_i32_81 = arith.constant 128 : i32
    %432 = vector.broadcast %c128_i32_81 : i32 to vector<2x128xi32>
    %433 = arith.select %431, %302, %432 : vector<2x128xi1>, vector<2x128xi32>
    %cst_82 = arith.constant dense<2147483647> : vector<2xi32>
    %434 = vector.multi_reduction <minsi>, %433, %cst_82 [1] : vector<2x128xi32> to vector<2xi32>
    %435 = vector.shape_cast %434 : vector<2xi32> to vector<2x1xi32>
    %436 = vector.broadcast %435 : vector<2x1xi32> to vector<2x128xi32>
    %437 = arith.cmpi eq, %302, %436 : vector<2x128xi32>
    %438 = arith.extui %437 : vector<2x128xi1> to vector<2x128xi32>
    %439 = arith.sitofp %438 : vector<2x128xi32> to vector<2x128xf32>
    %cst_83 = arith.constant dense<0.000000e+00> : vector<2x96xf32>
    %440 = tpu.matmul %439, %290, %cst_83 {dimension_numbers = #tpu.dot_dimension_numbers<[1], [0], [0], [1], [0, 0, 1, 1], [], []>} : vector<2x128xf32>, vector<128x96xf32>, vector<2x96xf32> -> vector<2x96xf32>
    %441 = arith.addf %440, %295 : vector<2x96xf32>
    %cst_84 = arith.constant dense<0.000000e+00> : vector<2x96xf32>
    %442 = tpu.matmul %425, %291, %cst_84 {dimension_numbers = #tpu.dot_dimension_numbers<[1], [0], [0], [1], [0, 0, 1, 1], [], []>} : vector<2x32xf32>, vector<32x96xf32>, vector<2x96xf32> -> vector<2x96xf32>
    %443 = arith.addf %442, %298 : vector<2x96xf32>
    %444 = vector.extract_strided_slice %441 {offsets = [0, 0], sizes = [2, 32], strides = [1, 1]} : vector<2x96xf32> to vector<2x32xf32>
    %445 = vector.extract_strided_slice %443 {offsets = [0, 0], sizes = [2, 32], strides = [1, 1]} : vector<2x96xf32> to vector<2x32xf32>
    %446 = arith.addf %444, %445 : vector<2x32xf32>
    %447 = arith.negf %446 : vector<2x32xf32>
    %448 = math.exp %447 : vector<2x32xf32>
    %cst_85 = arith.constant 1.000000e+00 : f32
    %449 = vector.broadcast %cst_85 : f32 to vector<2x32xf32>
    %450 = arith.addf %449, %448 : vector<2x32xf32>
    %451 = arith.divf %449, %450 : vector<2x32xf32>
    %452 = vector.extract_strided_slice %441 {offsets = [0, 32], sizes = [2, 32], strides = [1, 1]} : vector<2x96xf32> to vector<2x32xf32>
    %453 = vector.extract_strided_slice %443 {offsets = [0, 32], sizes = [2, 32], strides = [1, 1]} : vector<2x96xf32> to vector<2x32xf32>
    %454 = arith.addf %452, %453 : vector<2x32xf32>
    %455 = arith.negf %454 : vector<2x32xf32>
    %456 = math.exp %455 : vector<2x32xf32>
    %cst_86 = arith.constant 1.000000e+00 : f32
    %457 = vector.broadcast %cst_86 : f32 to vector<2x32xf32>
    %458 = arith.addf %457, %456 : vector<2x32xf32>
    %459 = arith.divf %457, %458 : vector<2x32xf32>
    %460 = vector.extract_strided_slice %441 {offsets = [0, 64], sizes = [2, 32], strides = [1, 1]} : vector<2x96xf32> to vector<2x32xf32>
    %461 = vector.extract_strided_slice %443 {offsets = [0, 64], sizes = [2, 32], strides = [1, 1]} : vector<2x96xf32> to vector<2x32xf32>
    %462 = arith.mulf %451, %461 : vector<2x32xf32>
    %463 = arith.addf %460, %462 : vector<2x32xf32>
    %464 = math.tanh %463 : vector<2x32xf32>
    %cst_87 = arith.constant 1.000000e+00 : f32
    %465 = vector.broadcast %cst_87 : f32 to vector<2x32xf32>
    %466 = arith.subf %465, %459 : vector<2x32xf32>
    %467 = arith.mulf %466, %464 : vector<2x32xf32>
    %468 = arith.mulf %459, %425 : vector<2x32xf32>
    %469 = arith.addf %467, %468 : vector<2x32xf32>
    %cst_88 = arith.constant dense<0.000000e+00> : vector<2x128xf32>
    %470 = tpu.matmul %469, %292, %cst_88 {dimension_numbers = #tpu.dot_dimension_numbers<[1], [0], [0], [1], [0, 0, 1, 1], [], []>} : vector<2x32xf32>, vector<32x128xf32>, vector<2x128xf32> -> vector<2x128xf32>
    %471 = arith.addf %470, %301 : vector<2x128xf32>
    %cst_89 = arith.constant dense<0xFF800000> : vector<2xf32>
    %472 = vector.multi_reduction <maximumf>, %471, %cst_89 [1] : vector<2x128xf32> to vector<2xf32>
    %473 = vector.shape_cast %472 : vector<2xf32> to vector<2x1xf32>
    %474 = vector.broadcast %473 : vector<2x1xf32> to vector<2x128xf32>
    %475 = arith.cmpf oeq, %471, %474 : vector<2x128xf32>
    %c128_i32_90 = arith.constant 128 : i32
    %476 = vector.broadcast %c128_i32_90 : i32 to vector<2x128xi32>
    %477 = arith.select %475, %302, %476 : vector<2x128xi1>, vector<2x128xi32>
    %cst_91 = arith.constant dense<2147483647> : vector<2xi32>
    %478 = vector.multi_reduction <minsi>, %477, %cst_91 [1] : vector<2x128xi32> to vector<2xi32>
    %479 = vector.shape_cast %478 : vector<2xi32> to vector<2x1xi32>
    %480 = vector.broadcast %479 : vector<2x1xi32> to vector<2x128xi32>
    %481 = arith.cmpi eq, %302, %480 : vector<2x128xi32>
    %482 = arith.extui %481 : vector<2x128xi1> to vector<2x128xi32>
    %483 = arith.sitofp %482 : vector<2x128xi32> to vector<2x128xf32>
    %cst_92 = arith.constant dense<0.000000e+00> : vector<2x96xf32>
    %484 = tpu.matmul %483, %290, %cst_92 {dimension_numbers = #tpu.dot_dimension_numbers<[1], [0], [0], [1], [0, 0, 1, 1], [], []>} : vector<2x128xf32>, vector<128x96xf32>, vector<2x96xf32> -> vector<2x96xf32>
    %485 = arith.addf %484, %295 : vector<2x96xf32>
    %cst_93 = arith.constant dense<0.000000e+00> : vector<2x96xf32>
    %486 = tpu.matmul %469, %291, %cst_93 {dimension_numbers = #tpu.dot_dimension_numbers<[1], [0], [0], [1], [0, 0, 1, 1], [], []>} : vector<2x32xf32>, vector<32x96xf32>, vector<2x96xf32> -> vector<2x96xf32>
    %487 = arith.addf %486, %298 : vector<2x96xf32>
    %488 = vector.extract_strided_slice %485 {offsets = [0, 0], sizes = [2, 32], strides = [1, 1]} : vector<2x96xf32> to vector<2x32xf32>
    %489 = vector.extract_strided_slice %487 {offsets = [0, 0], sizes = [2, 32], strides = [1, 1]} : vector<2x96xf32> to vector<2x32xf32>
    %490 = arith.addf %488, %489 : vector<2x32xf32>
    %491 = arith.negf %490 : vector<2x32xf32>
    %492 = math.exp %491 : vector<2x32xf32>
    %cst_94 = arith.constant 1.000000e+00 : f32
    %493 = vector.broadcast %cst_94 : f32 to vector<2x32xf32>
    %494 = arith.addf %493, %492 : vector<2x32xf32>
    %495 = arith.divf %493, %494 : vector<2x32xf32>
    %496 = vector.extract_strided_slice %485 {offsets = [0, 32], sizes = [2, 32], strides = [1, 1]} : vector<2x96xf32> to vector<2x32xf32>
    %497 = vector.extract_strided_slice %487 {offsets = [0, 32], sizes = [2, 32], strides = [1, 1]} : vector<2x96xf32> to vector<2x32xf32>
    %498 = arith.addf %496, %497 : vector<2x32xf32>
    %499 = arith.negf %498 : vector<2x32xf32>
    %500 = math.exp %499 : vector<2x32xf32>
    %cst_95 = arith.constant 1.000000e+00 : f32
    %501 = vector.broadcast %cst_95 : f32 to vector<2x32xf32>
    %502 = arith.addf %501, %500 : vector<2x32xf32>
    %503 = arith.divf %501, %502 : vector<2x32xf32>
    %504 = vector.extract_strided_slice %485 {offsets = [0, 64], sizes = [2, 32], strides = [1, 1]} : vector<2x96xf32> to vector<2x32xf32>
    %505 = vector.extract_strided_slice %487 {offsets = [0, 64], sizes = [2, 32], strides = [1, 1]} : vector<2x96xf32> to vector<2x32xf32>
    %506 = arith.mulf %495, %505 : vector<2x32xf32>
    %507 = arith.addf %504, %506 : vector<2x32xf32>
    %508 = math.tanh %507 : vector<2x32xf32>
    %cst_96 = arith.constant 1.000000e+00 : f32
    %509 = vector.broadcast %cst_96 : f32 to vector<2x32xf32>
    %510 = arith.subf %509, %503 : vector<2x32xf32>
    %511 = arith.mulf %510, %508 : vector<2x32xf32>
    %512 = arith.mulf %503, %469 : vector<2x32xf32>
    %513 = arith.addf %511, %512 : vector<2x32xf32>
    %cst_97 = arith.constant dense<0.000000e+00> : vector<2x128xf32>
    %514 = tpu.matmul %513, %292, %cst_97 {dimension_numbers = #tpu.dot_dimension_numbers<[1], [0], [0], [1], [0, 0, 1, 1], [], []>} : vector<2x32xf32>, vector<32x128xf32>, vector<2x128xf32> -> vector<2x128xf32>
    %515 = arith.addf %514, %301 : vector<2x128xf32>
    %cst_98 = arith.constant dense<0xFF800000> : vector<2xf32>
    %516 = vector.multi_reduction <maximumf>, %515, %cst_98 [1] : vector<2x128xf32> to vector<2xf32>
    %517 = vector.shape_cast %516 : vector<2xf32> to vector<2x1xf32>
    %518 = vector.broadcast %517 : vector<2x1xf32> to vector<2x128xf32>
    %519 = arith.cmpf oeq, %515, %518 : vector<2x128xf32>
    %c128_i32_99 = arith.constant 128 : i32
    %520 = vector.broadcast %c128_i32_99 : i32 to vector<2x128xi32>
    %521 = arith.select %519, %302, %520 : vector<2x128xi1>, vector<2x128xi32>
    %cst_100 = arith.constant dense<2147483647> : vector<2xi32>
    %522 = vector.multi_reduction <minsi>, %521, %cst_100 [1] : vector<2x128xi32> to vector<2xi32>
    %523 = vector.shape_cast %522 : vector<2xi32> to vector<2x1xi32>
    %524 = vector.broadcast %523 : vector<2x1xi32> to vector<2x128xi32>
    %525 = arith.cmpi eq, %302, %524 : vector<2x128xi32>
    %526 = arith.extui %525 : vector<2x128xi1> to vector<2x128xi32>
    %527 = arith.sitofp %526 : vector<2x128xi32> to vector<2x128xf32>
    %cst_101 = arith.constant dense<0.000000e+00> : vector<2x96xf32>
    %528 = tpu.matmul %527, %290, %cst_101 {dimension_numbers = #tpu.dot_dimension_numbers<[1], [0], [0], [1], [0, 0, 1, 1], [], []>} : vector<2x128xf32>, vector<128x96xf32>, vector<2x96xf32> -> vector<2x96xf32>
    %529 = arith.addf %528, %295 : vector<2x96xf32>
    %cst_102 = arith.constant dense<0.000000e+00> : vector<2x96xf32>
    %530 = tpu.matmul %513, %291, %cst_102 {dimension_numbers = #tpu.dot_dimension_numbers<[1], [0], [0], [1], [0, 0, 1, 1], [], []>} : vector<2x32xf32>, vector<32x96xf32>, vector<2x96xf32> -> vector<2x96xf32>
    %531 = arith.addf %530, %298 : vector<2x96xf32>
    %532 = vector.extract_strided_slice %529 {offsets = [0, 0], sizes = [2, 32], strides = [1, 1]} : vector<2x96xf32> to vector<2x32xf32>
    %533 = vector.extract_strided_slice %531 {offsets = [0, 0], sizes = [2, 32], strides = [1, 1]} : vector<2x96xf32> to vector<2x32xf32>
    %534 = arith.addf %532, %533 : vector<2x32xf32>
    %535 = arith.negf %534 : vector<2x32xf32>
    %536 = math.exp %535 : vector<2x32xf32>
    %cst_103 = arith.constant 1.000000e+00 : f32
    %537 = vector.broadcast %cst_103 : f32 to vector<2x32xf32>
    %538 = arith.addf %537, %536 : vector<2x32xf32>
    %539 = arith.divf %537, %538 : vector<2x32xf32>
    %540 = vector.extract_strided_slice %529 {offsets = [0, 32], sizes = [2, 32], strides = [1, 1]} : vector<2x96xf32> to vector<2x32xf32>
    %541 = vector.extract_strided_slice %531 {offsets = [0, 32], sizes = [2, 32], strides = [1, 1]} : vector<2x96xf32> to vector<2x32xf32>
    %542 = arith.addf %540, %541 : vector<2x32xf32>
    %543 = arith.negf %542 : vector<2x32xf32>
    %544 = math.exp %543 : vector<2x32xf32>
    %cst_104 = arith.constant 1.000000e+00 : f32
    %545 = vector.broadcast %cst_104 : f32 to vector<2x32xf32>
    %546 = arith.addf %545, %544 : vector<2x32xf32>
    %547 = arith.divf %545, %546 : vector<2x32xf32>
    %548 = vector.extract_strided_slice %529 {offsets = [0, 64], sizes = [2, 32], strides = [1, 1]} : vector<2x96xf32> to vector<2x32xf32>
    %549 = vector.extract_strided_slice %531 {offsets = [0, 64], sizes = [2, 32], strides = [1, 1]} : vector<2x96xf32> to vector<2x32xf32>
    %550 = arith.mulf %539, %549 : vector<2x32xf32>
    %551 = arith.addf %548, %550 : vector<2x32xf32>
    %552 = math.tanh %551 : vector<2x32xf32>
    %cst_105 = arith.constant 1.000000e+00 : f32
    %553 = vector.broadcast %cst_105 : f32 to vector<2x32xf32>
    %554 = arith.subf %553, %547 : vector<2x32xf32>
    %555 = arith.mulf %554, %552 : vector<2x32xf32>
    %556 = arith.mulf %547, %513 : vector<2x32xf32>
    %557 = arith.addf %555, %556 : vector<2x32xf32>
    %cst_106 = arith.constant dense<0.000000e+00> : vector<2x128xf32>
    %558 = tpu.matmul %557, %292, %cst_106 {dimension_numbers = #tpu.dot_dimension_numbers<[1], [0], [0], [1], [0, 0, 1, 1], [], []>} : vector<2x32xf32>, vector<32x128xf32>, vector<2x128xf32> -> vector<2x128xf32>
    %559 = arith.addf %558, %301 : vector<2x128xf32>
    %cst_107 = arith.constant 0.000000e+00 : f32
    %560 = vector.broadcast %cst_107 : f32 to vector<4x128xf32>
    %561 = tpu.concatenate %339, %383, %427, %471, %515, %559, %560 in 0 : vector<2x128xf32>, vector<2x128xf32>, vector<2x128xf32>, vector<2x128xf32>, vector<2x128xf32>, vector<2x128xf32>, vector<4x128xf32> -> vector<16x128xf32>
    %c0_108 = arith.constant 0 : index
    %c0_109 = arith.constant 0 : index
    %562 = vector.load %arg12[%c0_108, %c0_109] : memref<16x128xf32, #tpu.memory_space<vmem>>, vector<16x128xf32>
    tpu.vector_store %arg12[%c0_108, %c0_109], %561 {strides = array<i32>} : memref<16x128xf32, #tpu.memory_space<vmem>>, vector<16x128xf32>,
    %c0_110 = arith.constant 0 : index
    %c0_111 = arith.constant 0 : index
    %563 = vector.load %arg13[%c0_110, %c0_111] : memref<2x32xf32, #tpu.memory_space<vmem>>, vector<2x32xf32>
    tpu.vector_store %arg13[%c0_110, %c0_111], %557 {strides = array<i32>} : memref<2x32xf32, #tpu.memory_space<vmem>>, vector<2x32xf32>,
    return
  }
}

</mosaic_0001>

<bundles_post_ra>
// kernel: _forward_core.1
= control target key start
LH: loop header
LB: loop body
LE: loop exit
PB: predicated region body
PF: predicated region fallthrough
CT: control target
= control target key end

     0   :  { %v3624_v1 = vmov 0   ;;  %v3625_v3 = vmov 0.0   ;;  %vm3626_vm0 = vmmov 0   ;;  %s4612_s0 = inlined_call_operand.vmem [shape: s32[2,1], index: 0, kind: input, shape index: {}]   ;;  %s4613_s1 = inlined_call_operand.vmem [shape: s32[16,1], index: 1, kind: input, shape index: {}]   ;;  %s4614_s2 = inlined_call_operand.vmem [shape: f32[128,96], index: 2, kind: input, shape index: {}]   ;;  %s4615_s3 = inlined_call_operand.vmem [shape: f32[32,96], index: 3, kind: input, shape index: {}]   ;;  %s4616_s4 = inlined_call_operand.vmem [shape: f32[1,96], index: 4, kind: input, shape index: {}]   ;;  %s4617_s5 = inlined_call_operand.vmem [shape: f32[1,96], index: 5, kind: input, shape index: {}]   ;;  %s4618_s6 = inlined_call_operand.vmem [shape: f32[128,96], index: 6, kind: input, shape index: {}]   ;;  %s4619_s7 = inlined_call_operand.vmem [shape: f32[32,96], index: 7, kind: input, shape index: {}]   ;;  %s4620_s8 = inlined_call_operand.vmem [shape: f32[1,96], index: 8, kind: input, shape index: {}]   ;;  %s4621_s9 = inlined_call_operand.vmem [shape: f32[1,96], index: 9, kind: input, shape index: {}]   ;;  %s4622_s10 = inlined_call_operand.vmem [shape: f32[32,128], index: 10, kind: input, shape index: {}]   ;;  %s4623_s11 = inlined_call_operand.vmem [shape: f32[1,128], index: 11, kind: input, shape index: {}]   ;;  %s4624_s12 = inlined_call_operand.vmem [shape: f32[16,128], index: 12, kind: output, shape index: {0}]   ;;  %s4625_s13 = inlined_call_operand.hbm [shape: f32[2,32], index: 13, kind: output, shape index: {1}]  }
   0x1   :  { %v45_v0 = vld [vmem:[%s4613_s1] sm:$0xff]  ;;  %3495 = vset.pattern.permute.xlu0 %v3624_v1  ;;  %3057 = vmatprep.subr.mxu1 %v3625_v3  ;;  %v3715_v4 = vld [vmem:[%s4615_s3 + $0x18] sm:$0xff]  ;;  %v3720_v5 = vld [vmem:[%s4615_s3 + $0x10] sm:$0xff] }
   0x2   :  { %v3709_v2 = vld [vmem:[%s4612_s0] sm:$0x3]  ;;  %50 = vperm.xlu0 %3495, %v45_v0   ;;  %3058 = vmatpush3.msra.mxu1 %v3715_v4  ;;  %v76_v6 = vld [vmem:[%s4614_s2 + $0x78] sm:$0xff]  ;;  %v46_v7 = vld [vmem:[%s4613_s1 + $0x8] sm:$0xff] }
   0x3   :  { %3059 = vmatprep.subr.mxu1 %v3625_v3  ;;  %v3733_v8 = vld [vmem:[%s4615_s3 + $0x8] sm:$0xff]  ;;  %3065 = vmatprep.mubr.msk.f32.mxu1 %vm3626_vm0, %v3625_v3  ;;  %vm270_vm1 = vcmp.gt.s32.totalorder %v3709_v2, 0  ;;  %v75_v9 = vld [vmem:[%s4614_s2 + $0x70] sm:$0xff]  ;;  %v3746_v10 = vld [vmem:[%s4615_s3] sm:$0xff] }
   0x4   :  { %3060 = vmatpush3.msra.mxu1 %v3720_v5  ;;  %3022 = vmatprep.subr.mxu0 %v76_v6  ;;  %v74_v11 = vld [vmem:[%s4614_s2 + $0x68] sm:$0xff]  ;;  %v271_v12 = vsel %vm270_vm1, 1, %v3624_v1  ;;  %v73_v13 = vld [vmem:[%s4614_s2 + $0x60] sm:$0xff] }
   0x5   :  { %3061 = vmatprep.subr.mxu1 %v3625_v3  ;;  %3023 = vmatpush3.msra.mxu0 %v76_v6 }
   0x6   :  { %53 = vperm.xlu0 %3495, %v46_v7   ;;  %3062 = vmatpush3.msra.mxu1 %v3733_v8 }
   0x7   :  { %3063 = vmatprep.subr.mxu1 %v3625_v3  ;;  %3024 = vmatprep.subr.mxu0 %v75_v9 }
   0x8   :  { %3064 = vmatpush3.msra.mxu1 %v3746_v10  ;;  %3025 = vmatpush3.msra.mxu0 %v75_v9 }
   0x9   :  { %19 = vsyncpa [#allocation3], 0  ;;  %3066 = vmatmul.mubr.f32.vlgmr.msra.gmra.mxu1 %v3625_v3  ;;  %3026 = vmatprep.subr.mxu0 %v74_v11  ;;  %v72_v14 = vld [vmem:[%s4614_s2 + $0x58] sm:$0xff]  ;;  %v71_v15 = vld [vmem:[%s4614_s2 + $0x50] sm:$0xff]  ;;  %v47_v26 = vlaneseq  ;;  %v3627_v29 = vmov 1.0   ;;  %s3628_s15 = smov 64  }
   0xa   :  { %273 = vperm.xlu0 %3495, %v271_v12   ;;  %3027 = vmatpush3.msra.mxu0 %v74_v11  ;;  %v70_v16 = vld [vmem:[%s4614_s2 + $0x48] sm:$0xff]  ;;  %v69_v17 = vld [vmem:[%s4614_s2 + $0x40] sm:$0xff]  ;;  %v68_v18 = vld [vmem:[%s4614_s2 + $0x38] sm:$0xff]  ;;  %vm170_vm5 = vcmask 261120   ;;  %vm382_vm6 = vcmp.gt.s32.totalorder %v3709_v2, 1  ;;  %vm500_vm8 = vcmp.gt.s32.totalorder %v3709_v2, 2 }
   0xb   :  { %3028 = vmatprep.subr.mxu0 %v73_v13  ;;  %3068 = vmatprep.subr.mxu1 %v3625_v3  ;;  %v67_v19 = vld [vmem:[%s4614_s2 + $0x30] sm:$0xff]  ;;  %v66_v20 = vld [vmem:[%s4614_s2 + $0x28] sm:$0xff]  ;;  %v65_v21 = vld [vmem:[%s4614_s2 + $0x20] sm:$0xff]  ;;  %v3808_v27 = vand.u32 127, %v47_v26  ;;  %v383_v12 = vsel %vm382_vm6, 1, %v3624_v1  ;;  %vm617_vm10 = vcmp.gt.s32.totalorder %v3709_v2, 3 }
   0xc   :  { %3029 = vmatpush3.msra.mxu0 %v73_v13  ;;  %3069 = vmatpush3.msra.mxu1 %v3715_v4  ;;  %v64_v22 = vld [vmem:[%s4614_s2 + $0x18] sm:$0xff]  ;;  %v63_v23 = vld [vmem:[%s4614_s2 + $0x10] sm:$0xff]  ;;  %v62_v24 = vld [vmem:[%s4614_s2 + $0x8] sm:$0xff]  ;;  %vm731_vm12 = vcmp.gt.s32.totalorder %v3709_v2, 4  ;;  %vm843_vm14 = vcmp.gt.s32.totalorder %v3709_v2, 5  ;;  %vm961_vm1 = vcmp.gt.s32.totalorder %v3709_v2, 6 }
   0xd   :  { %3030 = vmatprep.subr.mxu0 %v72_v14  ;;  %3070 = vmatprep.subr.mxu1 %v3625_v3  ;;  %v61_v25 = vld [vmem:[%s4614_s2] sm:$0xff] }
   0xe   :  { %3031 = vmatpush3.msra.mxu0 %v72_v14  ;;  %3071 = vmatpush3.msra.mxu1 %v3720_v5  ;;  %v3827_v31 = vld [vmem:[%s4617_s5] ss:$0 sm:$0xff]  ;;  %s3630_s5 = smov 32  }
   0xf   :  { %3032 = vmatprep.subr.mxu0 %v71_v15  ;;  %3072 = vmatprep.subr.mxu1 %v3625_v3  ;;  %v2750_v35 = vld [vmem:[%s4616_s4] ss:$0 sm:$0xff]  ;;  %s3629_s4 = smov 96  }
  0x10   :  { %3033 = vmatpush3.msra.mxu0 %v71_v15  ;;  %3073 = vmatpush3.msra.mxu1 %v3733_v8 }
  0x11   :  { %3034 = vmatprep.subr.mxu0 %v70_v16  ;;  %3074 = vmatprep.subr.mxu1 %v3625_v3 }
  0x12   :  { %3035 = vmatpush3.msra.mxu0 %v70_v16  ;;  %3075 = vmatpush3.msra.mxu1 %v3746_v10 }
  0x13   :  { %3036 = vmatprep.subr.mxu0 %v69_v17  ;;  %3076 = vmatprep.mubr.msk.f32.mxu1 %vm3626_vm0, %v3625_v3 }
  0x14   :  { %3037 = vmatpush3.msra.mxu0 %v69_v17  ;;  %3079 = vmatprep.subr.mxu1 %v3625_v3 }
  0x15   :  { %3038 = vmatprep.subr.mxu0 %v68_v18  ;;  %3496 = vset.pattern.permute.xlu1 %v3624_v1 }
  0x16   :  { %3039 = vmatpush3.msra.mxu0 %v68_v18 }
  0x17   :  { %3040 = vmatprep.subr.mxu0 %v67_v19 }
  0x18   :  { %3041 = vmatpush3.msra.mxu0 %v67_v19 }
  0x19   :  { %3042 = vmatprep.subr.mxu0 %v66_v20 }
  0x1a   :  { %3043 = vmatpush3.msra.mxu0 %v66_v20 }
  0x1b   :  { %3044 = vmatprep.subr.mxu0 %v65_v21 }
  0x1c   :  { %3045 = vmatpush3.msra.mxu0 %v65_v21 }
  0x1d   :  { %3046 = vmatprep.subr.mxu0 %v64_v22 }
  0x1e   :  { %3047 = vmatpush3.msra.mxu0 %v64_v22 }
  0x1f   :  { %3048 = vmatprep.subr.mxu0 %v63_v23 }
  0x20   :  { %3049 = vmatpush3.msra.mxu0 %v63_v23 }
  0x21   :  { %3050 = vmatprep.subr.mxu0 %v62_v24 }
  0x22   :  { %3051 = vmatpush3.msra.mxu0 %v62_v24 }
  0x23   :  { %3052 = vmatprep.subr.mxu0 %v61_v25 }
  0x24   :  { %3053 = vmatpush3.msra.mxu0 %v61_v25 }
  0x25   :  { %3101 = vmatprep.subr.mxu0 %v3625_v3 }
  0x7d   :  { %v51_v28 = vpop.permute.xlu0 %50 }
  0x7e   :  { %vm55_vm2 = vcmp.eq.s32.totalorder %v3808_v27, %v51_v28 }
  0x7f   :  { %3054 = vmatprep.mubr.msk.f32.mxu0 %vm55_vm2, %v3627_v29 }
  0x81   :  { %v54_v30 = vpop.permute.xlu0 %53 }
  0x82   :  { %vm56_vm3 = vcmp.eq.s32.totalorder %v3808_v27, %v54_v30 }
  0x83   :  { %3055 = vmatmul.mubr.msk.f32.vlgmr.msra.gmra.mxu0 %vm56_vm3, %v3627_v29  ;;  %vm1078_vm3 = vcmp.gt.s32.totalorder %v3709_v2, 7  ;;  %v3993_v2 = vld [vmem:[%s4618_s6 + $0x68] sm:$0xff] }
  0x84   :  { %3102 = vmatpush3.msra.mxu0 %v3715_v4  ;;  %3109 = vmatprep.mubr.msk.f32.mxu0 %vm3626_vm0, %v3625_v3 }
  0x85   :  { %3103 = vmatprep.subr.mxu0 %v3625_v3  ;;  %v274_v52 = vpop.permute.xlu0 %273 }
  0x86   :  { %3104 = vmatpush3.msra.mxu0 %v3720_v5  ;;  %vm275_vm4 = vcmp.eq.s32.totalorder %v274_v52, 1 }
  0x87   :  { %3105 = vmatprep.subr.mxu0 %v3625_v3 }
  0x88   :  { %3106 = vmatpush3.msra.mxu0 %v3733_v8 }
  0x89   :  { %3107 = vmatprep.subr.mxu0 %v3625_v3 }
  0x8a   :  { %3108 = vmatpush3.msra.mxu0 %v3746_v10 }
  0x8b   :  { %3123 = vmatprep.subr.mxu0 %v3625_v3 }
  0xc9   :  { %v240_v32 = vpop.f32.mrf.mxu1 }
  0xca   :  { %v241_v33 = vadd.f32 %v3827_v31, %v240_v32 }
  0xcb   :  { %v3067_v34 = vpop.f32.mrf.mxu1 }
  0xcc   :  { %252 = vrot.lane.b32.xlu1 %v241_v33, %s3628_s15 }
 0x13e   :  { %v253_v44 = vpop.permute.xlu1 %252 }
 0x143   :  { %v3056_v36 = vpop.f32.mrf.mxu0 }
 0x144   :  { %v3834_v37 = vadd.f32 %v3056_v36, %v2750_v35 }
 0x145   :  { %v150_v38 = vpop.f32.mrf.mxu0 }
 0x146   :  { %v3836_v39 = vadd.f32 %v2750_v35, %v150_v38 }
 0x148   :  { %v244_v40 = vadd.f32 %v241_v33, %v3836_v39 }
 0x14a   :  { %v2754_v41 = vmul.f32 -1.442695, %v244_v40 }
 0x14c   :  { %3497 = vpow2.f32 %v2754_v41 }
 0x159   :  { %v3498_v42 = vpop.eup %3497 }
 0x15a   :  { %v248_v43 = vadd.f32 1.0, %v3498_v42 }
 0x15c   :  { %3499 = vrcp.f32 %v248_v43 }
 0x169   :  { %v3500_v45 = vpop.eup %3499 }
 0x16a   :  { %v255_v46 = vmul.f32 %v3500_v45, %v253_v44  ;;  %v262_v50 = vsub.f32 1.0, %v3500_v45  ;;  %v268_v53 = vmul.f32 0.0, %v3500_v45 }
 0x16c   :  { %257 = vrot.lane.b32.xlu1 %v255_v46, %s3628_s15  ;;  %v501_v46 = vsel %vm500_vm8, 1, %v3624_v1 }
 0x1de   :  { %v258_v47 = vpop.permute.xlu1 %257 }
 0x1df   :  { %v260_v48 = vadd.f32 %v258_v47, %v3836_v39 }
 0x1e1   :  { %3501 = vtanh.f32 %v260_v48 }
 0x1ee   :  { %v3502_v49 = vpop.eup %3501 }
 0x1ef   :  { %264 = vrot.lane.b32.xlu1 %v3502_v49, %s3629_s4 }
 0x261   :  { %v265_v51 = vpop.permute.xlu1 %264 }
 0x262   :  { %v267_v54 = vmul.f32 %v265_v51, %v262_v50 }
 0x264   :  { %v269_v55 = vadd.f32 %v268_v53, %v267_v54 }
 0x266   :  { %v276_v56 = vsel %vm275_vm4, %v269_v55, 0.0  ;;  %vm1135_vm4 = vcmp.eq.s32.totalorder %v3808_v27, 1 }
 0x267   :  { %278 = vrot.lane.b32.xlu0 %v276_v56, %s3629_s4  ;;  %v378_v16 = vrot.slane %v276_v56, 6 }
 0x2d9   :  { %v279_v57 = vpop.permute.xlu0 %278 }
 0x2da   :  { %3077 = vmatmul.mubr.msk.f32.vlgmr.msra.gmra.mxu1 %vm170_vm5, %v279_v57 }
 0x2db   :  { %3080 = vmatpush3.msra.mxu1 %v3715_v4  ;;  %3087 = vmatprep.mubr.msk.f32.mxu1 %vm3626_vm0, %v3625_v3 }
 0x2dc   :  { %3081 = vmatprep.subr.mxu1 %v3625_v3 }
 0x2dd   :  { %3082 = vmatpush3.msra.mxu1 %v3720_v5 }
 0x2de   :  { %3083 = vmatprep.subr.mxu1 %v3625_v3 }
 0x2df   :  { %3084 = vmatpush3.msra.mxu1 %v3733_v8 }
 0x2e0   :  { %3085 = vmatprep.subr.mxu1 %v3625_v3 }
 0x2e1   :  { %3086 = vmatpush3.msra.mxu1 %v3746_v10 }
 0x2e2   :  { %3090 = vmatprep.subr.mxu1 %v3625_v3 }
 0x39a   :  { %v348_v58 = vpop.f32.mrf.mxu1 }
 0x39b   :  { %v349_v59 = vadd.f32 %v3827_v31, %v348_v58 }
 0x39c   :  { %v3078_v60 = vpop.f32.mrf.mxu1 }
 0x39d   :  { %v353_v61 = vrot.slane %v349_v59, 6 }
 0x39f   :  { %362 = vrot.lane.b32.xlu1 %v353_v61, %s3628_s15  ;;  %v355_v62 = vadd.f32 %v353_v61, %v3836_v39 }
 0x3a1   :  { %v2756_v63 = vmul.f32 -1.442695, %v355_v62 }
 0x3a3   :  { %3503 = vpow2.f32 %v2756_v63 }
 0x3b0   :  { %v3504_v0 = vpop.eup %3503 }
 0x3b1   :  { %v359_v6 = vadd.f32 1.0, %v3504_v0 }
 0x3b3   :  { %3505 = vrcp.f32 %v359_v6 }
 0x3c0   :  { %v3506_v7 = vpop.eup %3505 }
 0x3c1   :  { %v372_v17 = vsub.f32 1.0, %v3506_v7  ;;  %v380_v20 = vmul.f32 %v3506_v7, %v378_v16 }
 0x411   :  { %v363_v9 = vpop.permute.xlu1 %362 }
 0x412   :  { %v365_v11 = vmul.f32 %v3506_v7, %v363_v9 }
 0x414   :  { %367 = vrot.lane.b32.xlu0 %v365_v11, %s3628_s15 }
 0x418   :  { %385 = vperm.xlu0 %3495, %v383_v12  }
 0x486   :  { %v368_v13 = vpop.permute.xlu0 %367 }
 0x487   :  { %v370_v14 = vadd.f32 %v368_v13, %v3836_v39 }
 0x489   :  { %3507 = vtanh.f32 %v370_v14 }
 0x493   :  { %v386_v23 = vpop.permute.xlu0 %385 }
 0x494   :  { %vm387_vm7 = vcmp.eq.s32.totalorder %v386_v23, 1 }
 0x496   :  { %v3508_v15 = vpop.eup %3507 }
 0x497   :  { %374 = vrot.lane.b32.xlu1 %v3508_v15, %s3629_s4  ;;  %v618_v15 = vsel %vm617_vm10, 1, %v3624_v1 }
 0x509   :  { %v375_v18 = vpop.permute.xlu1 %374 }
 0x50a   :  { %v377_v19 = vmul.f32 %v375_v18, %v372_v17 }
 0x50c   :  { %v381_v21 = vadd.f32 %v380_v20, %v377_v19 }
 0x50e   :  { %v389_v22 = vrot.slane %v381_v21, 2 }
 0x510   :  { %390 = vrot.lane.b32.xlu1 %v389_v22, %s3629_s4 }
 0x582   :  { %v391_v24 = vpop.permute.xlu1 %390 }
 0x583   :  { %v394_v25 = vsel %vm387_vm7, %v391_v24, %v279_v57  ;;  %vm1385_vm7 = vcmask 1041408  }
 0x584   :  { %3088 = vmatmul.mubr.msk.f32.vlgmr.msra.gmra.mxu1 %vm170_vm5, %v394_v25  ;;  %v494_v42 = vrot.slane %v394_v25, 4 }
 0x585   :  { %3091 = vmatpush3.msra.mxu1 %v3715_v4  ;;  %3098 = vmatprep.mubr.msk.f32.mxu1 %vm3626_vm0, %v3625_v3 }
 0x586   :  { %3092 = vmatprep.subr.mxu1 %v3625_v3 }
 0x587   :  { %3093 = vmatpush3.msra.mxu1 %v3720_v5 }
 0x588   :  { %3094 = vmatprep.subr.mxu1 %v3625_v3 }
 0x589   :  { %3095 = vmatpush3.msra.mxu1 %v3733_v8 }
 0x58a   :  { %3096 = vmatprep.subr.mxu1 %v3625_v3 }
 0x58b   :  { %3097 = vmatpush3.msra.mxu1 %v3746_v10 }
 0x58c   :  { %3112 = vmatprep.subr.mxu1 %v3625_v3 }
 0x644   :  { %v464_v26 = vpop.f32.mrf.mxu1 }
 0x645   :  { %v465_v28 = vadd.f32 %v3827_v31, %v464_v26 }
 0x646   :  { %v3089_v30 = vpop.f32.mrf.mxu1 }
 0x647   :  { %v469_v32 = vrot.slane %v465_v28, 4  ;;  %v732_v30 = vsel %vm731_vm12, 1, %v3624_v1 }
 0x649   :  { %478 = vrot.lane.b32.xlu0 %v469_v32, %s3628_s15  ;;  %v471_v33 = vadd.f32 %v469_v32, %v3836_v39 }
 0x64b   :  { %v2758_v34 = vmul.f32 -1.442695, %v471_v33 }
 0x64d   :  { %3509 = vpow2.f32 %v2758_v34 }
 0x65a   :  { %v3510_v35 = vpop.eup %3509 }
 0x65b   :  { %v475_v36 = vadd.f32 1.0, %v3510_v35 }
 0x65d   :  { %3511 = vrcp.f32 %v475_v36 }
 0x66a   :  { %v3512_v38 = vpop.eup %3511 }
 0x66b   :  { %v488_v48 = vsub.f32 1.0, %v3512_v38 }
 0x6bb   :  { %v479_v40 = vpop.permute.xlu0 %478 }
 0x6bc   :  { %v481_v41 = vmul.f32 %v3512_v38, %v479_v40 }
 0x6be   :  { %483 = vrot.lane.b32.xlu1 %v481_v41, %s3628_s15 }
 0x6c2   :  { %495 = vrot.lane.b32.xlu1 %v494_v42, %s3630_s5 }
 0x730   :  { %v484_v43 = vpop.permute.xlu1 %483 }
 0x731   :  { %v486_v44 = vadd.f32 %v484_v43, %v3836_v39 }
 0x733   :  { %3513 = vtanh.f32 %v486_v44 }
 0x734   :  { %v496_v47 = vpop.permute.xlu1 %495 }
 0x735   :  { %v498_v50 = vmul.f32 %v3512_v38, %v496_v47 }
 0x740   :  { %v3514_v45 = vpop.eup %3513 }
 0x741   :  { %490 = vrot.lane.b32.xlu0 %v3514_v45, %s3629_s4 }
 0x745   :  { %503 = vperm.xlu0 %3495, %v501_v46  }
 0x7b3   :  { %v491_v49 = vpop.permute.xlu0 %490 }
 0x7b4   :  { %v493_v51 = vmul.f32 %v491_v49, %v488_v48 }
 0x7b6   :  { %v499_v52 = vadd.f32 %v498_v50, %v493_v51 }
 0x7b8   :  { %v507_v53 = vrot.slane %v499_v52, 4 }
 0x7ba   :  { %508 = vrot.lane.b32.xlu1 %v507_v53, %s3629_s4 }
 0x7c0   :  { %v504_v54 = vpop.permute.xlu0 %503 }
 0x7c1   :  { %vm505_vm9 = vcmp.eq.s32.totalorder %v504_v54, 1 }
 0x82c   :  { %v509_v55 = vpop.permute.xlu1 %508 }
 0x82d   :  { %v511_v56 = vsel %vm505_vm9, %v509_v55, %v394_v25 }
 0x82e   :  { %3099 = vmatmul.mubr.msk.f32.vlgmr.msra.gmra.mxu1 %vm170_vm5, %v511_v56  ;;  %v611_v11 = vrot.slane %v511_v56, 2 }
 0x82f   :  { %3113 = vmatpush3.msra.mxu1 %v3715_v4  ;;  %3120 = vmatprep.mubr.msk.f32.mxu1 %vm3626_vm0, %v3625_v3 }
 0x830   :  { %3114 = vmatprep.subr.mxu1 %v3625_v3 }
 0x831   :  { %3115 = vmatpush3.msra.mxu1 %v3720_v5 }
 0x832   :  { %3116 = vmatprep.subr.mxu1 %v3625_v3 }
 0x833   :  { %3117 = vmatpush3.msra.mxu1 %v3733_v8 }
 0x834   :  { %3118 = vmatprep.subr.mxu1 %v3625_v3 }
 0x835   :  { %3119 = vmatpush3.msra.mxu1 %v3746_v10 }
 0x836   :  { %3134 = vmatprep.subr.mxu1 %v3625_v3 }
 0x8ee   :  { %v581_v57 = vpop.f32.mrf.mxu1 }
 0x8ef   :  { %v582_v58 = vadd.f32 %v3827_v31, %v581_v57 }
 0x8f0   :  { %v3100_v59 = vpop.f32.mrf.mxu1 }
 0x8f1   :  { %v586_v60 = vrot.slane %v582_v58, 2 }
 0x8f3   :  { %595 = vrot.lane.b32.xlu0 %v586_v60, %s3628_s15  ;;  %v588_v61 = vadd.f32 %v586_v60, %v3836_v39 }
 0x8f5   :  { %v2760_v62 = vmul.f32 -1.442695, %v588_v61 }
 0x8f7   :  { %3515 = vpow2.f32 %v2760_v62 }
 0x904   :  { %v3516_v63 = vpop.eup %3515 }
 0x905   :  { %v592_v0 = vadd.f32 1.0, %v3516_v63 }
 0x907   :  { %3517 = vrcp.f32 %v592_v0 }
 0x914   :  { %v3518_v6 = vpop.eup %3517 }
 0x915   :  { %v605_v17 = vsub.f32 1.0, %v3518_v6 }
 0x965   :  { %v596_v7 = vpop.permute.xlu0 %595 }
 0x966   :  { %v598_v9 = vmul.f32 %v3518_v6, %v596_v7 }
 0x968   :  { %600 = vrot.lane.b32.xlu1 %v598_v9, %s3628_s15 }
 0x96c   :  { %612 = vrot.lane.b32.xlu1 %v611_v11, %s3630_s5 }
 0x9da   :  { %v601_v12 = vpop.permute.xlu1 %600 }
 0x9db   :  { %v603_v13 = vadd.f32 %v601_v12, %v3836_v39 }
 0x9dd   :  { %3519 = vtanh.f32 %v603_v13 }
 0x9de   :  { %v613_v16 = vpop.permute.xlu1 %612 }
 0x9df   :  { %v615_v19 = vmul.f32 %v3518_v6, %v613_v16 }
 0x9ea   :  { %v3520_v14 = vpop.eup %3519 }
 0x9eb   :  { %607 = vrot.lane.b32.xlu0 %v3520_v14, %s3629_s4 }
 0x9ef   :  { %620 = vperm.xlu0 %3495, %v618_v15  }
 0xa5d   :  { %v608_v18 = vpop.permute.xlu0 %607 }
 0xa5e   :  { %v610_v20 = vmul.f32 %v608_v18, %v605_v17 }
 0xa60   :  { %v616_v21 = vadd.f32 %v615_v19, %v610_v20 }
 0xa62   :  { %v624_v22 = vrot.slane %v616_v21, 6 }
 0xa64   :  { %625 = vrot.lane.b32.xlu1 %v624_v22, %s3629_s4 }
 0xa6a   :  { %v621_v23 = vpop.permute.xlu0 %620 }
 0xa6b   :  { %vm622_vm11 = vcmp.eq.s32.totalorder %v621_v23, 1 }
 0xad6   :  { %v626_v39 = vpop.permute.xlu1 %625 }
 0xad7   :  { %v628_v24 = vsel %vm622_vm11, %v626_v39, %v511_v56 }
 0xad8   :  { %3110 = vmatmul.mubr.msk.f32.vlgmr.msra.gmra.mxu0 %vm170_vm5, %v628_v24 }
 0xad9   :  { %3124 = vmatpush3.msra.mxu0 %v3715_v4  ;;  %3131 = vmatprep.mubr.msk.f32.mxu0 %vm3626_vm0, %v3625_v3 }
 0xada   :  { %3125 = vmatprep.subr.mxu0 %v3625_v3 }
 0xadb   :  { %3126 = vmatpush3.msra.mxu0 %v3720_v5 }
 0xadc   :  { %3127 = vmatprep.subr.mxu0 %v3625_v3 }
 0xadd   :  { %3128 = vmatpush3.msra.mxu0 %v3733_v8 }
 0xade   :  { %3129 = vmatprep.subr.mxu0 %v3625_v3 }
 0xadf   :  { %3130 = vmatpush3.msra.mxu0 %v3746_v10 }
 0xae0   :  { %3145 = vmatprep.subr.mxu0 %v3625_v3 }
 0xb98   :  { %v698_v25 = vpop.f32.mrf.mxu0 }
 0xb99   :  { %v699_v26 = vadd.f32 %v3827_v31, %v698_v25 }
 0xb9a   :  { %v3111_v28 = vpop.f32.mrf.mxu0 }
 0xb9b   :  { %710 = vrot.lane.b32.xlu0 %v699_v26, %s3628_s15  ;;  %v702_v32 = vadd.f32 %v699_v26, %v3834_v37 }
 0xb9d   :  { %v2762_v33 = vmul.f32 -1.442695, %v702_v32 }
 0xb9f   :  { %734 = vperm.xlu0 %3495, %v732_v30   ;;  %3521 = vpow2.f32 %v2762_v33 }
 0xba3   :  { %726 = vrot.lane.b32.xlu0 %v628_v24, %s3630_s5 }
 0xbac   :  { %v3522_v34 = vpop.eup %3521 }
 0xbad   :  { %v706_v35 = vadd.f32 1.0, %v3522_v34  ;;  %v962_v34 = vsel %vm961_vm1, 1, %v3624_v1 }
 0xbaf   :  { %3523 = vrcp.f32 %v706_v35 }
 0xbbc   :  { %v3524_v36 = vpop.eup %3523 }
 0xbbd   :  { %v720_v46 = vsub.f32 1.0, %v3524_v36 }
 0xc0d   :  { %v711_v38 = vpop.permute.xlu0 %710 }
 0xc0e   :  { %v713_v40 = vmul.f32 %v3524_v36, %v711_v38 }
 0xc10   :  { %715 = vrot.lane.b32.xlu1 %v713_v40, %s3628_s15 }
 0xc1a   :  { %v735_v44 = vpop.permute.xlu0 %734 }
 0xc1b   :  { %vm736_vm13 = vcmp.eq.s32.totalorder %v735_v44, 1 }
 0xc1e   :  { %v727_v45 = vpop.permute.xlu0 %726 }
 0xc1f   :  { %v729_v48 = vmul.f32 %v3524_v36, %v727_v45 }
 0xc82   :  { %v716_v41 = vpop.permute.xlu1 %715 }
 0xc83   :  { %v718_v42 = vadd.f32 %v716_v41, %v3834_v37 }
 0xc85   :  { %3525 = vtanh.f32 %v718_v42 }
 0xc92   :  { %v3526_v43 = vpop.eup %3525 }
 0xc93   :  { %722 = vrot.lane.b32.xlu1 %v3526_v43, %s3629_s4 }
 0xd05   :  { %v723_v47 = vpop.permute.xlu1 %722 }
 0xd06   :  { %v725_v49 = vmul.f32 %v723_v47, %v720_v46 }
 0xd08   :  { %v730_v50 = vadd.f32 %v729_v48, %v725_v49 }
 0xd0a   :  { %v737_v51 = vsel %vm736_vm13, %v730_v50, %v727_v45 }
 0xd0b   :  { %739 = vrot.lane.b32.xlu1 %v737_v51, %s3629_s4  ;;  %v839_v0 = vrot.slane %v737_v51, 6 }
 0xd7d   :  { %v740_v52 = vpop.permute.xlu1 %739 }
 0xd7e   :  { %3121 = vmatmul.mubr.msk.f32.vlgmr.msra.gmra.mxu1 %vm170_vm5, %v740_v52 }
 0xd7f   :  { %3135 = vmatpush3.msra.mxu1 %v3715_v4  ;;  %3142 = vmatprep.mubr.msk.f32.mxu1 %vm3626_vm0, %v3625_v3 }
 0xd80   :  { %3136 = vmatprep.subr.mxu1 %v3625_v3 }
 0xd81   :  { %3137 = vmatpush3.msra.mxu1 %v3720_v5 }
 0xd82   :  { %3138 = vmatprep.subr.mxu1 %v3625_v3 }
 0xd83   :  { %3139 = vmatpush3.msra.mxu1 %v3733_v8 }
 0xd84   :  { %3140 = vmatprep.subr.mxu1 %v3625_v3 }
 0xd85   :  { %3141 = vmatpush3.msra.mxu1 %v3746_v10  ;;  %v844_v10 = vsel %vm843_vm14, 1, %v3624_v1 }
 0xd86   :  { %3180 = vmatprep.subr.mxu1 %v3625_v3 }
 0xe3e   :  { %v809_v53 = vpop.f32.mrf.mxu1 }
 0xe3f   :  { %v810_v4 = vadd.f32 %v3827_v31, %v809_v53 }
 0xe40   :  { %v3122_v54 = vpop.f32.mrf.mxu1 }
 0xe41   :  { %v814_v55 = vrot.slane %v810_v4, 6 }
 0xe43   :  { %823 = vrot.lane.b32.xlu0 %v814_v55, %s3628_s15  ;;  %v816_v56 = vadd.f32 %v814_v55, %v3834_v37 }
 0xe45   :  { %v2764_v5 = vmul.f32 -1.442695, %v816_v56 }
 0xe47   :  { %3527 = vpow2.f32 %v2764_v5 }
 0xe54   :  { %v3528_v57 = vpop.eup %3527 }
 0xe55   :  { %v820_v58 = vadd.f32 1.0, %v3528_v57 }
 0xe57   :  { %3529 = vrcp.f32 %v820_v58 }
 0xe64   :  { %v3530_v8 = vpop.eup %3529 }
 0xe65   :  { %v833_v6 = vsub.f32 1.0, %v3530_v8  ;;  %v841_v9 = vmul.f32 %v3530_v8, %v839_v0  ;;  %v4041_v0 = vld [vmem:[%s4618_s6 + $0x48] sm:$0xff] }
 0xeb5   :  { %v824_v59 = vpop.permute.xlu0 %823 }
 0xeb6   :  { %v826_v60 = vmul.f32 %v3530_v8, %v824_v59  ;;  %v3980_v8 = vld [vmem:[%s4618_s6 + $0x78] sm:$0xff]  ;;  %v3985_v59 = vld [vmem:[%s4618_s6 + $0x70] sm:$0xff] }
 0xeb8   :  { %828 = vrot.lane.b32.xlu1 %v826_v60, %s3628_s15  ;;  %v1079_v60 = vsel %vm1078_vm3, 1, %v3624_v1  ;;  %v4005_v1 = vld [vmem:[%s4619_s7 + $0x18] sm:$0xff]  ;;  %vm2721_vm3 = vcmask 1045504  }
 0xebc   :  { %846 = vperm.xlu1 %3496, %v844_v10   ;;  %v4012_v10 = vld [vmem:[%s4619_s7 + $0x10] sm:$0xff] }
 0xf2a   :  { %v829_v61 = vpop.permute.xlu1 %828 }
 0xf2b   :  { %v831_v62 = vadd.f32 %v829_v61, %v3834_v37  ;;  %v4018_v61 = vld [vmem:[%s4618_s6 + $0x58] sm:$0xff] }
 0xf2d   :  { %3531 = vtanh.f32 %v831_v62  ;;  %v4024_v62 = vld [vmem:[%s4619_s7 + $0x8] sm:$0xff] }
 0xf37   :  { %v847_v14 = vpop.permute.xlu1 %846 }
 0xf38   :  { %vm848_vm15 = vcmp.eq.s32.totalorder %v847_v14, 1  ;;  %v4091_v14 = vld [vmem:[%s4618_s6 + $0x10] sm:$0xff] }
 0xf3a   :  { %v3532_v63 = vpop.eup %3531 }
 0xf3b   :  { %835 = vrot.lane.b32.xlu0 %v3532_v63, %s3629_s4  ;;  %v4032_v63 = vld [vmem:[%s4618_s6 + $0x50] sm:$0xff] }
 0xfad   :  { %v836_v7 = vpop.permute.xlu0 %835 }
 0xfae   :  { %v838_v11 = vmul.f32 %v836_v7, %v833_v6  ;;  %v4049_v6 = vld [vmem:[%s4618_s6 + $0x40] sm:$0xff]  ;;  %v4056_v7 = vld [vmem:[%s4618_s6 + $0x38] sm:$0xff] }
 0xfb0   :  { %v842_v12 = vadd.f32 %v841_v9, %v838_v11  ;;  %v4063_v9 = vld [vmem:[%s4618_s6 + $0x30] sm:$0xff]  ;;  %v4070_v11 = vld [vmem:[%s4618_s6 + $0x28] sm:$0xff] }
 0xfb2   :  { %v850_v13 = vrot.slane %v842_v12, 2  ;;  %v4077_v12 = vld [vmem:[%s4618_s6 + $0x20] sm:$0xff] }
 0xfb4   :  { %851 = vrot.lane.b32.xlu0 %v850_v13, %s3629_s4  ;;  %v4084_v13 = vld [vmem:[%s4618_s6 + $0x18] sm:$0xff] }
0x1026   :  { %v852_v15 = vpop.permute.xlu0 %851 }
0x1027   :  { %v855_v16 = vsel %vm848_vm15, %v852_v15, %v740_v52  ;;  %v4098_v15 = vld [vmem:[%s4618_s6 + $0x8] sm:$0xff] }
0x1028   :  { %3132 = vmatmul.mubr.msk.f32.vlgmr.msra.gmra.mxu0 %vm170_vm5, %v855_v16  ;;  %v955_v28 = vrot.slane %v855_v16, 4 }
0x1029   :  { %3177 = vmatprep.mubr.msk.f32.mxu0 %vm3626_vm0, %v3625_v3  ;;  %3146 = vmatpush3.msra.mxu0 %v3980_v8 }
0x102a   :  { %3147 = vmatprep.subr.mxu0 %v3625_v3 }
0x102b   :  { %3148 = vmatpush3.msra.mxu0 %v3985_v59 }
0x102c   :  { %3149 = vmatprep.subr.mxu0 %v3625_v3 }
0x102d   :  { %3150 = vmatpush3.msra.mxu0 %v3993_v2 }
0x102e   :  { %3151 = vmatprep.subr.mxu0 %v3625_v3 }
0x10e8   :  { %v925_v17 = vpop.f32.mrf.mxu0 }
0x10e9   :  { %v926_v18 = vadd.f32 %v3827_v31, %v925_v17  ;;  %v4112_v17 = vld [vmem:[%s4619_s7] sm:$0xff] }
0x10ea   :  { %v3133_v19 = vpop.f32.mrf.mxu0 }
0x10eb   :  { %v930_v20 = vrot.slane %v926_v18, 4 }
0x10ed   :  { %939 = vrot.lane.b32.xlu1 %v930_v20, %s3628_s15  ;;  %v932_v21 = vadd.f32 %v930_v20, %v3834_v37 }
0x10ef   :  { %v2766_v22 = vmul.f32 -1.442695, %v932_v21 }
0x10f1   :  { %3533 = vpow2.f32 %v2766_v22 }
0x10fe   :  { %v3534_v23 = vpop.eup %3533 }
0x10ff   :  { %v936_v39 = vadd.f32 1.0, %v3534_v23 }
0x1101   :  { %3535 = vrcp.f32 %v936_v39 }
0x110e   :  { %v3536_v24 = vpop.eup %3535 }
0x110f   :  { %v949_v36 = vsub.f32 1.0, %v3536_v24 }
0x115f   :  { %v940_v25 = vpop.permute.xlu1 %939 }
0x1160   :  { %v942_v26 = vmul.f32 %v3536_v24, %v940_v25 }
0x1162   :  { %944 = vrot.lane.b32.xlu0 %v942_v26, %s3628_s15 }
0x1166   :  { %956 = vrot.lane.b32.xlu0 %v955_v28, %s3630_s5 }
0x11d4   :  { %v945_v30 = vpop.permute.xlu0 %944 }
0x11d5   :  { %v947_v32 = vadd.f32 %v945_v30, %v3834_v37 }
0x11d7   :  { %3537 = vtanh.f32 %v947_v32  ;;  %v4140_v32 = vld [vmem:[%s4621_s9] ss:$0 sm:$0xff] }
0x11d8   :  { %v957_v35 = vpop.permute.xlu0 %956 }
0x11d9   :  { %v959_v40 = vmul.f32 %v3536_v24, %v957_v35 }
0x11e4   :  { %v3538_v33 = vpop.eup %3537 }
0x11e5   :  { %951 = vrot.lane.b32.xlu1 %v3538_v33, %s3629_s4 }
0x11e9   :  { %964 = vperm.xlu1 %3496, %v962_v34  }
0x1257   :  { %v952_v38 = vpop.permute.xlu1 %951 }
0x1258   :  { %v954_v41 = vmul.f32 %v952_v38, %v949_v36  ;;  %v4147_v36 = vld [vmem:[%s4620_s8] ss:$0 sm:$0xff] }
0x125a   :  { %v960_v42 = vadd.f32 %v959_v40, %v954_v41 }
0x125c   :  { %v968_v43 = vrot.slane %v960_v42, 4 }
0x125e   :  { %969 = vrot.lane.b32.xlu0 %v968_v43, %s3629_s4 }
0x1264   :  { %v965_v44 = vpop.permute.xlu1 %964 }
0x1265   :  { %vm966_vm2 = vcmp.eq.s32.totalorder %v965_v44, 1 }
0x12d0   :  { %v970_v45 = vpop.permute.xlu0 %969 }
0x12d1   :  { %v3959_v46 = vsel %vm966_vm2, %v970_v45, %v855_v16  ;;  %v4107_v16 = vld [vmem:[%s4618_s6] sm:$0xff]  ;;  %vm2719_vm2 = vcmask 1043456  }
0x12d2   :  { %3143 = vmatmul.mubr.msk.f32.vlgmr.msra.gmra.mxu1 %vm170_vm5, %v3959_v46 }
0x12d3   :  { %3188 = vmatprep.mubr.msk.f32.mxu1 %vm3626_vm0, %v3625_v3  ;;  %3181 = vmatpush3.msra.mxu1 %v4005_v1 }
0x12d4   :  { %3182 = vmatprep.subr.mxu1 %v3625_v3 }
0x12d5   :  { %3183 = vmatpush3.msra.mxu1 %v4012_v10 }
0x12d6   :  { %3184 = vmatprep.subr.mxu1 %v3625_v3 }
0x12d7   :  { %3185 = vmatpush3.msra.mxu1 %v4024_v62 }
0x12d8   :  { %3186 = vmatprep.subr.mxu1 %v3625_v3 }
0x12d9   :  { %3187 = vmatpush3.msra.mxu1 %v4112_v17 }
0x12da   :  { %3191 = vmatprep.subr.mxu1 %v3625_v3 }
0x1392   :  { %v1042_v47 = vpop.f32.mrf.mxu1 }
0x1393   :  { %v1043_v48 = vadd.f32 %v3827_v31, %v1042_v47  ;;  %v1072_v31 = vrot.slane %v3959_v46, 2 }
0x1394   :  { %v3144_v49 = vpop.f32.mrf.mxu1 }
0x1395   :  { %v1047_v50 = vrot.slane %v1043_v48, 2  ;;  %v4155_v49 = vld [vmem:[%s4622_s10 + $0x18] sm:$0xff] }
0x1397   :  { %1056 = vrot.lane.b32.xlu1 %v1047_v50, %s3628_s15  ;;  %v1049_v51 = vadd.f32 %v1047_v50, %v3834_v37  ;;  %v4160_v50 = vld [vmem:[%s4622_s10 + $0x10] sm:$0xff] }
0x1399   :  { %v2768_v52 = vmul.f32 -1.442695, %v1049_v51  ;;  %v4167_v51 = vld [vmem:[%s4622_s10 + $0x8] sm:$0xff] }
0x139b   :  { %3539 = vpow2.f32 %v2768_v52  ;;  %v4174_v52 = vld [vmem:[%s4622_s10] sm:$0xff] }
0x13a8   :  { %v3540_v53 = vpop.eup %3539 }
0x13a9   :  { %v1053_v4 = vadd.f32 1.0, %v3540_v53 }
0x13ab   :  { %3541 = vrcp.f32 %v1053_v4 }
0x13b8   :  { %v3968_v54 = vpop.eup %3541 }
0x13b9   :  { %v1066_v19 = vsub.f32 1.0, %v3968_v54 }
0x1409   :  { %v1057_v55 = vpop.permute.xlu1 %1056 }
0x140a   :  { %v1059_v56 = vmul.f32 %v3968_v54, %v1057_v55 }
0x140c   :  { %1061 = vrot.lane.b32.xlu0 %v1059_v56, %s3628_s15 }
0x1410   :  { %1073 = vrot.lane.b32.xlu0 %v1072_v31, %s3630_s5 }
0x147e   :  { %v1062_v5 = vpop.permute.xlu0 %1061 }
0x147f   :  { %v1064_v57 = vadd.f32 %v1062_v5, %v3834_v37  ;;  %v4000_v37 = vld [vmem:[%s4618_s6 + $0x60] sm:$0xff] }
0x1480   :  { %3152 = vmatpush3.msra.mxu0 %v4000_v37 }
0x1481   :  { %3543 = vtanh.f32 %v1064_v57  ;;  %3153 = vmatprep.subr.mxu0 %v3625_v3 }
0x1482   :  { %3154 = vmatpush3.msra.mxu0 %v4018_v61  ;;  %v1074_v18 = vpop.permute.xlu0 %1073 }
0x1483   :  { %3155 = vmatprep.subr.mxu0 %v3625_v3  ;;  %v1076_v21 = vmul.f32 %v3968_v54, %v1074_v18 }
0x1484   :  { %3156 = vmatpush3.msra.mxu0 %v4032_v63 }
0x1485   :  { %3157 = vmatprep.subr.mxu0 %v3625_v3 }
0x1486   :  { %3158 = vmatpush3.msra.mxu0 %v4041_v0 }
0x1487   :  { %3159 = vmatprep.subr.mxu0 %v3625_v3 }
0x1488   :  { %3160 = vmatpush3.msra.mxu0 %v4049_v6 }
0x1489   :  { %3161 = vmatprep.subr.mxu0 %v3625_v3 }
0x148a   :  { %3162 = vmatpush3.msra.mxu0 %v4056_v7 }
0x148b   :  { %3163 = vmatprep.subr.mxu0 %v3625_v3 }
0x148c   :  { %3164 = vmatpush3.msra.mxu0 %v4063_v9 }
0x148d   :  { %3165 = vmatprep.subr.mxu0 %v3625_v3 }
0x148e   :  { %v3544_v58 = vpop.eup %3543  ;;  %3166 = vmatpush3.msra.mxu0 %v4070_v11 }
0x148f   :  { %1068 = vrot.lane.b32.xlu1 %v3544_v58, %s3629_s4  ;;  %3167 = vmatprep.subr.mxu0 %v3625_v3  ;;  %v4234_v58 = vld [vmem:[%s4623_s11] ss:$0 sm:$0xff] }
0x1490   :  { %3168 = vmatpush3.msra.mxu0 %v4077_v12 }
0x1491   :  { %3169 = vmatprep.subr.mxu0 %v3625_v3 }
0x1492   :  { %3170 = vmatpush3.msra.mxu0 %v4084_v13 }
0x1493   :  { %1081 = vperm.xlu1 %3496, %v1079_v60   ;;  %3171 = vmatprep.subr.mxu0 %v3625_v3 }
0x1494   :  { %3172 = vmatpush3.msra.mxu0 %v4091_v14 }
0x1495   :  { %3173 = vmatprep.subr.mxu0 %v3625_v3 }
0x1496   :  { %3174 = vmatpush3.msra.mxu0 %v4098_v15 }
0x1497   :  { %3175 = vmatprep.subr.mxu0 %v3625_v3 }
0x1498   :  { %3176 = vmatpush3.msra.mxu0 %v4107_v16 }
0x1499   :  { %3178 = vmatmul.mubr.msk.f32.vlgmr.msra.gmra.mxu0 %vm1135_vm4, %v3627_v29  ;;  %3237 = vmatprep.subr.mxu0 %v3625_v3 }
0x149a   :  { %3245 = vmatprep.mubr.msk.f32.mxu0 %vm3626_vm0, %v3625_v3  ;;  %3238 = vmatpush3.msra.mxu0 %v4005_v1 }
0x149b   :  { %3239 = vmatprep.subr.mxu0 %v3625_v3 }
0x149c   :  { %3240 = vmatpush3.msra.mxu0 %v4012_v10 }
0x149d   :  { %3241 = vmatprep.subr.mxu0 %v3625_v3 }
0x149e   :  { %3242 = vmatpush3.msra.mxu0 %v4024_v62 }
0x149f   :  { %3243 = vmatprep.subr.mxu0 %v3625_v3 }
0x14a0   :  { %3244 = vmatpush3.msra.mxu0 %v4112_v17 }
0x14a1   :  { %3248 = vmatprep.subr.mxu0 %v3625_v3 }
0x1501   :  { %v1069_v20 = vpop.permute.xlu1 %1068 }
0x1502   :  { %v1071_v22 = vmul.f32 %v1069_v20, %v1066_v19 }
0x1504   :  { %v1077_v23 = vadd.f32 %v1076_v21, %v1071_v22 }
0x1506   :  { %v1085_v39 = vrot.slane %v1077_v23, 6 }
0x1508   :  { %1086 = vrot.lane.b32.xlu0 %v1085_v39, %s3629_s4 }
0x150e   :  { %v1082_v24 = vpop.permute.xlu1 %1081 }
0x150f   :  { %vm1083_vm6 = vcmp.eq.s32.totalorder %v1082_v24, 1 }
0x1559   :  { %v1204_v28 = vpop.f32.mrf.mxu0 }
0x155a   :  { %v1205_v38 = vadd.f32 %v4147_v36, %v1204_v28 }
0x155b   :  { %v3179_v30 = vpop.f32.mrf.mxu0 }
0x157a   :  { %v1087_v25 = vpop.permute.xlu0 %1086 }
0x157b   :  { %v1089_v26 = vsel %vm1083_vm6, %v1087_v25, %v3959_v46 }
0x157c   :  { %3189 = vmatmul.mubr.msk.f32.vlgmr.msra.gmra.mxu1 %vm170_vm5, %v1089_v26 }
0x157d   :  { %3199 = vmatprep.mubr.msk.f32.mxu1 %vm3626_vm0, %v3625_v3  ;;  %3192 = vmatpush3.msra.mxu1 %v4155_v49 }
0x157e   :  { %3193 = vmatprep.subr.mxu1 %v3625_v3 }
0x157f   :  { %3194 = vmatpush3.msra.mxu1 %v4160_v50 }
0x1580   :  { %3195 = vmatprep.subr.mxu1 %v3625_v3 }
0x1581   :  { %3196 = vmatpush3.msra.mxu1 %v4167_v51 }
0x1582   :  { %3197 = vmatprep.subr.mxu1 %v3625_v3 }
0x1583   :  { %3198 = vmatpush3.msra.mxu1 %v4174_v52 }
0x1584   :  { %3202 = vmatprep.subr.mxu1 %v3625_v3 }
0x163c   :  { %v1277_v33 = vpop.f32.mrf.mxu1 }
0x163d   :  { %v1278_v34 = vadd.f32 %v4140_v32, %v1277_v33 }
0x163e   :  { %v3190_v35 = vpop.f32.mrf.mxu1 }
0x163f   :  { %1289 = vrot.lane.b32.xlu1 %v1278_v34, %s3628_s15  ;;  %v1281_v40 = vadd.f32 %v1278_v34, %v1205_v38 }
0x1641   :  { %v2775_v41 = vmul.f32 -1.442695, %v1281_v40 }
0x1643   :  { %3545 = vpow2.f32 %v2775_v41 }
0x1650   :  { %v3546_v42 = vpop.eup %3545 }
0x1651   :  { %v1285_v43 = vadd.f32 1.0, %v3546_v42 }
0x1653   :  { %3547 = vrcp.f32 %v1285_v43 }
0x1660   :  { %v3548_v44 = vpop.eup %3547 }
0x1661   :  { %v1299_v54 = vsub.f32 1.0, %v3548_v44 }
0x16b1   :  { %v1290_v45 = vpop.permute.xlu1 %1289 }
0x16b2   :  { %v1292_v46 = vmul.f32 %v3548_v44, %v1290_v45 }
0x16b4   :  { %1294 = vrot.lane.b32.xlu0 %v1292_v46, %s3628_s15 }
0x16b8   :  { %1305 = vrot.lane.b32.xlu0 %v1089_v26, %s3630_s5 }
0x1726   :  { %v1295_v47 = vpop.permute.xlu0 %1294 }
0x1727   :  { %v1297_v48 = vadd.f32 %v1295_v47, %v1205_v38 }
0x1729   :  { %3549 = vtanh.f32 %v1297_v48 }
0x172a   :  { %v1306_v4 = vpop.permute.xlu0 %1305 }
0x172b   :  { %v1308_v56 = vmul.f32 %v3548_v44, %v1306_v4 }
0x1736   :  { %v3550_v53 = vpop.eup %3549 }
0x1737   :  { %1301 = vrot.lane.b32.xlu1 %v3550_v53, %s3629_s4 }
0x17a9   :  { %v1302_v55 = vpop.permute.xlu1 %1301 }
0x17aa   :  { %v1304_v31 = vmul.f32 %v1302_v55, %v1299_v54 }
0x17ac   :  { %v4181_v5 = vadd.f32 %v1308_v56, %v1304_v31 }
0x17ae   :  { %1311 = vrot.lane.b32.xlu1 %v4181_v5, %s3629_s4 }
0x1820   :  { %v1312_v57 = vpop.permute.xlu1 %1311 }
0x1821   :  { %3200 = vmatmul.mubr.msk.f32.vlgmr.msra.gmra.mxu1 %vm170_vm5, %v1312_v57  ;;  %3246 = vmatmul.mubr.msk.f32.vlgmr.msra.gmra.mxu0 %vm170_vm5, %v1312_v57 }
0x1822   :  { %3203 = vmatpush3.msra.mxu1 %v3980_v8  ;;  %3234 = vmatprep.mubr.msk.f32.mxu1 %vm3626_vm0, %v3625_v3 }
0x1823   :  { %3204 = vmatprep.subr.mxu1 %v3625_v3  ;;  %3249 = vmatpush3.msra.mxu0 %v4155_v49 }
0x1824   :  { %3205 = vmatpush3.msra.mxu1 %v3985_v59  ;;  %3250 = vmatprep.subr.mxu0 %v3625_v3 }
0x1825   :  { %3206 = vmatprep.subr.mxu1 %v3625_v3  ;;  %3251 = vmatpush3.msra.mxu0 %v4160_v50 }
0x1826   :  { %3207 = vmatpush3.msra.mxu1 %v3993_v2  ;;  %3252 = vmatprep.subr.mxu0 %v3625_v3 }
0x1827   :  { %3208 = vmatprep.subr.mxu1 %v3625_v3  ;;  %3253 = vmatpush3.msra.mxu0 %v4167_v51 }
0x1828   :  { %3209 = vmatpush3.msra.mxu1 %v4000_v37  ;;  %3254 = vmatprep.subr.mxu0 %v3625_v3 }
0x1829   :  { %3210 = vmatprep.subr.mxu1 %v3625_v3  ;;  %3255 = vmatpush3.msra.mxu0 %v4174_v52 }
0x182a   :  { %3211 = vmatpush3.msra.mxu1 %v4018_v61  ;;  %3256 = vmatprep.mubr.msk.f32.mxu0 %vm3626_vm0, %v3625_v3 }
0x182b   :  { %3212 = vmatprep.subr.mxu1 %v3625_v3  ;;  %3259 = vmatprep.subr.mxu0 %v3625_v3 }
0x182c   :  { %3213 = vmatpush3.msra.mxu1 %v4032_v63 }
0x182d   :  { %3214 = vmatprep.subr.mxu1 %v3625_v3 }
0x182e   :  { %3215 = vmatpush3.msra.mxu1 %v4041_v0 }
0x182f   :  { %3216 = vmatprep.subr.mxu1 %v3625_v3 }
0x1830   :  { %3217 = vmatpush3.msra.mxu1 %v4049_v6 }
0x1831   :  { %3218 = vmatprep.subr.mxu1 %v3625_v3 }
0x1832   :  { %3219 = vmatpush3.msra.mxu1 %v4056_v7 }
0x1833   :  { %3220 = vmatprep.subr.mxu1 %v3625_v3 }
0x1834   :  { %3221 = vmatpush3.msra.mxu1 %v4063_v9 }
0x1835   :  { %3222 = vmatprep.subr.mxu1 %v3625_v3 }
0x1836   :  { %3223 = vmatpush3.msra.mxu1 %v4070_v11 }
0x1837   :  { %3224 = vmatprep.subr.mxu1 %v3625_v3 }
0x1838   :  { %3225 = vmatpush3.msra.mxu1 %v4077_v12 }
0x1839   :  { %3226 = vmatprep.subr.mxu1 %v3625_v3 }
0x183a   :  { %3227 = vmatpush3.msra.mxu1 %v4084_v13 }
0x183b   :  { %3228 = vmatprep.subr.mxu1 %v3625_v3 }
0x183c   :  { %3229 = vmatpush3.msra.mxu1 %v4091_v14 }
0x183d   :  { %3230 = vmatprep.subr.mxu1 %v3625_v3 }
0x183e   :  { %3231 = vmatpush3.msra.mxu1 %v4098_v15 }
0x183f   :  { %3232 = vmatprep.subr.mxu1 %v3625_v3 }
0x1840   :  { %3233 = vmatpush3.msra.mxu1 %v4107_v16 }
0x1841   :  { %3294 = vmatprep.subr.mxu1 %v3625_v3 }
0x18e1   :  { %v1381_v60 = vpop.f32.mrf.mxu1  ;;  %v1545_v18 = vpop.f32.mrf.mxu0 }
0x18e2   :  { %v4237_v19 = vadd.f32 %v4234_v58, %v1381_v60  ;;  %v1546_v35 = vadd.f32 %v4140_v32, %v1545_v18 }
0x18e3   :  { %v3201_v20 = vpop.f32.mrf.mxu1  ;;  %v3247_v21 = vpop.f32.mrf.mxu0 }
0x18e4   :  { %v1386_v22 = vsel %vm1385_vm7, %v4237_v19, -inf }
0x18e5   :  { %1387 = vmax.xlane.f32.xlu0 %v1386_v22 }
0x196e   :  { %v1388_v23 = vpop.xlane.xlu0 %1387 }
0x196f   :  { %vm1389_vm8 = vcmp.eq.f32.partialorder %v4237_v19, %v1388_v23 }
0x1970   :  { %v1390_v39 = vsel %vm1389_vm8, %v3808_v27, 128 }
0x1971   :  { %v1391_v24 = vsel %vm1385_vm7, %v1390_v39, 2147483647 }
0x1972   :  { %v1393_v25 = vshra.s32 %v1391_v24, 16  ;;  %v1392_v28 = vand.u32 65535, %v1391_v24 }
0x1974   :  { %v1395_v26 = vcvt.s32.f32 %v1393_v25  ;;  %v1394_v33 = vcvt.s32.f32 %v1392_v28 }
0x1976   :  { %1396 = vmin.xlane.f32.xlu1 %v1395_v26 }
0x19ff   :  { %v1397_v30 = vpop.xlane.xlu1 %1396 }
0x1a00   :  { %vm1398_vm9 = vcmp.eq.f32.partialorder %v1395_v26, %v1397_v30  ;;  %v1403_v38 = vcvt.f32.s32 %v1397_v30 }
0x1a01   :  { %v1399_v34 = vsel %vm1398_vm9, %v1394_v33, inf }
0x1a02   :  { %1400 = vmin.xlane.f32.xlu0 %v1399_v34  ;;  %v1404_v41 = vshll.u32 %v1403_v38, 16 }
0x1a18   :  { %1557 = vrot.lane.b32.xlu0 %v1546_v35, %s3628_s15 }
0x1a8b   :  { %v1401_v40 = vpop.xlane.xlu0 %1400 }
0x1a8c   :  { %v1402_v42 = vcvt.f32.s32 %v1401_v40 }
0x1a8e   :  { %v1405_v43 = vadd.s32 %v1404_v41, %v1402_v42 }
0x1a8f   :  { %v1558_v55 = vpop.permute.xlu0 %1557 }
0x1a90   :  { %vm1406_vm10 = vcmp.eq.s32.totalorder %v3808_v27, %v1405_v43 }
0x1a91   :  { %3235 = vmatmul.mubr.msk.f32.vlgmr.msra.gmra.mxu1 %vm1406_vm10, %v3627_v29 }
0x1a92   :  { %3295 = vmatpush3.msra.mxu1 %v4005_v1  ;;  %3302 = vmatprep.mubr.msk.f32.mxu1 %vm3626_vm0, %v3625_v3 }
0x1a93   :  { %3296 = vmatprep.subr.mxu1 %v3625_v3 }
0x1a94   :  { %3297 = vmatpush3.msra.mxu1 %v4012_v10 }
0x1a95   :  { %3298 = vmatprep.subr.mxu1 %v3625_v3 }
0x1a96   :  { %3299 = vmatpush3.msra.mxu1 %v4024_v62 }
0x1a97   :  { %3300 = vmatprep.subr.mxu1 %v3625_v3 }
0x1a98   :  { %3301 = vmatpush3.msra.mxu1 %v4112_v17 }
0x1a99   :  { %3305 = vmatprep.subr.mxu1 %v3625_v3 }
0x1b51   :  { %v1475_v44 = vpop.f32.mrf.mxu1 }
0x1b52   :  { %v1476_v45 = vadd.f32 %v4147_v36, %v1475_v44 }
0x1b53   :  { %v3236_v46 = vpop.f32.mrf.mxu1 }
0x1b54   :  { %v1549_v47 = vadd.f32 %v1546_v35, %v1476_v45 }
0x1b56   :  { %v2780_v48 = vmul.f32 -1.442695, %v1549_v47 }
0x1b58   :  { %3551 = vpow2.f32 %v2780_v48 }
0x1b65   :  { %v3552_v53 = vpop.eup %3551 }
0x1b66   :  { %v1553_v4 = vadd.f32 1.0, %v3552_v53 }
0x1b68   :  { %3553 = vrcp.f32 %v1553_v4 }
0x1b75   :  { %v3554_v54 = vpop.eup %3553 }
0x1b76   :  { %v1560_v56 = vmul.f32 %v3554_v54, %v1558_v55  ;;  %v1567_v18 = vsub.f32 1.0, %v3554_v54  ;;  %v1573_v21 = vmul.f32 %v3554_v54, %v4181_v5 }
0x1b78   :  { %1562 = vrot.lane.b32.xlu1 %v1560_v56, %s3628_s15 }
0x1bea   :  { %v1563_v31 = vpop.permute.xlu1 %1562 }
0x1beb   :  { %v1565_v57 = vadd.f32 %v1563_v31, %v1476_v45 }
0x1bed   :  { %3555 = vtanh.f32 %v1565_v57 }
0x1bfa   :  { %v3556_v60 = vpop.eup %3555 }
0x1bfb   :  { %1569 = vrot.lane.b32.xlu1 %v3556_v60, %s3629_s4 }
0x1c6d   :  { %v1570_v20 = vpop.permute.xlu1 %1569 }
0x1c6e   :  { %v1572_v22 = vmul.f32 %v1570_v20, %v1567_v18 }
0x1c70   :  { %v4262_v23 = vadd.f32 %v1573_v21, %v1572_v22 }
0x1c72   :  { %1576 = vrot.lane.b32.xlu0 %v4262_v23, %s3629_s4 }
0x1ce4   :  { %v1577_v39 = vpop.permute.xlu0 %1576 }
0x1ce5   :  { %3257 = vmatmul.mubr.msk.f32.vlgmr.msra.gmra.mxu0 %vm170_vm5, %v1577_v39  ;;  %3303 = vmatmul.mubr.msk.f32.vlgmr.msra.gmra.mxu1 %vm170_vm5, %v1577_v39 }
0x1ce6   :  { %3260 = vmatpush3.msra.mxu0 %v3980_v8  ;;  %3291 = vmatprep.mubr.msk.f32.mxu0 %vm3626_vm0, %v3625_v3 }
0x1ce7   :  { %3261 = vmatprep.subr.mxu0 %v3625_v3  ;;  %3306 = vmatpush3.msra.mxu1 %v4155_v49 }
0x1ce8   :  { %3262 = vmatpush3.msra.mxu0 %v3985_v59  ;;  %3307 = vmatprep.subr.mxu1 %v3625_v3 }
0x1ce9   :  { %3263 = vmatprep.subr.mxu0 %v3625_v3  ;;  %3308 = vmatpush3.msra.mxu1 %v4160_v50 }
0x1cea   :  { %3264 = vmatpush3.msra.mxu0 %v3993_v2  ;;  %3309 = vmatprep.subr.mxu1 %v3625_v3 }
0x1ceb   :  { %3265 = vmatprep.subr.mxu0 %v3625_v3  ;;  %3310 = vmatpush3.msra.mxu1 %v4167_v51 }
0x1cec   :  { %3266 = vmatpush3.msra.mxu0 %v4000_v37  ;;  %3311 = vmatprep.subr.mxu1 %v3625_v3 }
0x1ced   :  { %3267 = vmatprep.subr.mxu0 %v3625_v3  ;;  %3312 = vmatpush3.msra.mxu1 %v4174_v52 }
0x1cee   :  { %3268 = vmatpush3.msra.mxu0 %v4018_v61  ;;  %3313 = vmatprep.mubr.msk.f32.mxu1 %vm3626_vm0, %v3625_v3 }
0x1cef   :  { %3269 = vmatprep.subr.mxu0 %v3625_v3  ;;  %3316 = vmatprep.subr.mxu1 %v3625_v3 }
0x1cf0   :  { %3270 = vmatpush3.msra.mxu0 %v4032_v63 }
0x1cf1   :  { %3271 = vmatprep.subr.mxu0 %v3625_v3 }
0x1cf2   :  { %3272 = vmatpush3.msra.mxu0 %v4041_v0 }
0x1cf3   :  { %3273 = vmatprep.subr.mxu0 %v3625_v3 }
0x1cf4   :  { %3274 = vmatpush3.msra.mxu0 %v4049_v6 }
0x1cf5   :  { %3275 = vmatprep.subr.mxu0 %v3625_v3 }
0x1cf6   :  { %3276 = vmatpush3.msra.mxu0 %v4056_v7 }
0x1cf7   :  { %3277 = vmatprep.subr.mxu0 %v3625_v3 }
0x1cf8   :  { %3278 = vmatpush3.msra.mxu0 %v4063_v9 }
0x1cf9   :  { %3279 = vmatprep.subr.mxu0 %v3625_v3 }
0x1cfa   :  { %3280 = vmatpush3.msra.mxu0 %v4070_v11 }
0x1cfb   :  { %3281 = vmatprep.subr.mxu0 %v3625_v3 }
0x1cfc   :  { %3282 = vmatpush3.msra.mxu0 %v4077_v12 }
0x1cfd   :  { %3283 = vmatprep.subr.mxu0 %v3625_v3 }
0x1cfe   :  { %3284 = vmatpush3.msra.mxu0 %v4084_v13 }
0x1cff   :  { %3285 = vmatprep.subr.mxu0 %v3625_v3 }
0x1d00   :  { %3286 = vmatpush3.msra.mxu0 %v4091_v14 }
0x1d01   :  { %3287 = vmatprep.subr.mxu0 %v3625_v3 }
0x1d02   :  { %3288 = vmatpush3.msra.mxu0 %v4098_v15 }
0x1d03   :  { %3289 = vmatprep.subr.mxu0 %v3625_v3 }
0x1d04   :  { %3290 = vmatpush3.msra.mxu0 %v4107_v16 }
0x1d05   :  { %3351 = vmatprep.subr.mxu0 %v3625_v3 }
0x1da5   :  { %v1646_v5 = vpop.f32.mrf.mxu0  ;;  %v1809_v24 = vpop.f32.mrf.mxu1 }
0x1da6   :  { %v4313_v25 = vadd.f32 %v4234_v58, %v1646_v5  ;;  %v1810_v33 = vadd.f32 %v4140_v32, %v1809_v24 }
0x1da7   :  { %v3258_v26 = vpop.f32.mrf.mxu0  ;;  %v3304_v28 = vpop.f32.mrf.mxu1 }
0x1da8   :  { %v1650_v30 = vsel %vm1385_vm7, %v4313_v25, -inf }
0x1da9   :  { %1651 = vmax.xlane.f32.xlu1 %v1650_v30 }
0x1dba   :  { %1821 = vrot.lane.b32.xlu1 %v1810_v33, %s3628_s15 }
0x1e32   :  { %v1652_v34 = vpop.xlane.xlu1 %1651 }
0x1e33   :  { %vm1653_vm11 = vcmp.eq.f32.partialorder %v4313_v25, %v1652_v34 }
0x1e34   :  { %v1654_v35 = vsel %vm1653_vm11, %v3808_v27, 128  ;;  %vm2728_vm11 = vcmask 254976  }
0x1e35   :  { %v1655_v38 = vsel %vm1385_vm7, %v1654_v35, 2147483647 }
0x1e36   :  { %v1657_v40 = vshra.s32 %v1655_v38, 16  ;;  %v1656_v42 = vand.u32 65535, %v1655_v38  ;;  %v1822_v21 = vpop.permute.xlu1 %1821 }
0x1e38   :  { %v1659_v41 = vcvt.s32.f32 %v1657_v40  ;;  %v1658_v44 = vcvt.s32.f32 %v1656_v42 }
0x1e3a   :  { %1660 = vmin.xlane.f32.xlu0 %v1659_v41 }
0x1ec3   :  { %v1661_v43 = vpop.xlane.xlu0 %1660 }
0x1ec4   :  { %vm1662_vm12 = vcmp.eq.f32.partialorder %v1659_v41, %v1661_v43  ;;  %v1667_v46 = vcvt.f32.s32 %v1661_v43 }
0x1ec5   :  { %v1663_v45 = vsel %vm1662_vm12, %v1658_v44, inf }
0x1ec6   :  { %1664 = vmin.xlane.f32.xlu0 %v1663_v45  ;;  %v1668_v48 = vshll.u32 %v1667_v46, 16 }
0x1f4f   :  { %v1665_v47 = vpop.xlane.xlu0 %1664 }
0x1f50   :  { %v1666_v53 = vcvt.f32.s32 %v1665_v47 }
0x1f52   :  { %v1669_v4 = vadd.s32 %v1668_v48, %v1666_v53 }
0x1f54   :  { %vm1670_vm13 = vcmp.eq.s32.totalorder %v3808_v27, %v1669_v4 }
0x1f55   :  { %3292 = vmatmul.mubr.msk.f32.vlgmr.msra.gmra.mxu0 %vm1670_vm13, %v3627_v29 }
0x1f56   :  { %3352 = vmatpush3.msra.mxu0 %v4005_v1  ;;  %3359 = vmatprep.mubr.msk.f32.mxu0 %vm3626_vm0, %v3625_v3 }
0x1f57   :  { %3353 = vmatprep.subr.mxu0 %v3625_v3 }
0x1f58   :  { %3354 = vmatpush3.msra.mxu0 %v4012_v10 }
0x1f59   :  { %3355 = vmatprep.subr.mxu0 %v3625_v3 }
0x1f5a   :  { %3356 = vmatpush3.msra.mxu0 %v4024_v62 }
0x1f5b   :  { %3357 = vmatprep.subr.mxu0 %v3625_v3 }
0x1f5c   :  { %3358 = vmatpush3.msra.mxu0 %v4112_v17 }
0x1f5d   :  { %3362 = vmatprep.subr.mxu0 %v3625_v3 }
0x2015   :  { %v1739_v54 = vpop.f32.mrf.mxu0 }
0x2016   :  { %v1740_v55 = vadd.f32 %v4147_v36, %v1739_v54 }
0x2017   :  { %v3293_v56 = vpop.f32.mrf.mxu0 }
0x2018   :  { %v1813_v31 = vadd.f32 %v1810_v33, %v1740_v55 }
0x201a   :  { %v2785_v57 = vmul.f32 -1.442695, %v1813_v31 }
0x201c   :  { %3557 = vpow2.f32 %v2785_v57 }
0x2029   :  { %v3558_v60 = vpop.eup %3557 }
0x202a   :  { %v1817_v18 = vadd.f32 1.0, %v3558_v60 }
0x202c   :  { %3559 = vrcp.f32 %v1817_v18 }
0x2039   :  { %v3560_v20 = vpop.eup %3559 }
0x203a   :  { %v1824_v22 = vmul.f32 %v3560_v20, %v1822_v21  ;;  %v1831_v26 = vsub.f32 1.0, %v3560_v20  ;;  %v1837_v30 = vmul.f32 %v3560_v20, %v4262_v23 }
0x203c   :  { %1826 = vrot.lane.b32.xlu0 %v1824_v22, %s3628_s15 }
0x20ae   :  { %v1827_v39 = vpop.permute.xlu0 %1826 }
0x20af   :  { %v1829_v5 = vadd.f32 %v1827_v39, %v1740_v55 }
0x20b1   :  { %3561 = vtanh.f32 %v1829_v5 }
0x20be   :  { %v3562_v24 = vpop.eup %3561 }
0x20bf   :  { %1833 = vrot.lane.b32.xlu1 %v3562_v24, %s3629_s4 }
0x2131   :  { %v1834_v28 = vpop.permute.xlu1 %1833 }
0x2132   :  { %v1836_v33 = vmul.f32 %v1834_v28, %v1831_v26 }
0x2134   :  { %v4338_v34 = vadd.f32 %v1837_v30, %v1836_v33 }
0x2136   :  { %1840 = vrot.lane.b32.xlu1 %v4338_v34, %s3629_s4 }
0x21a8   :  { %v1841_v35 = vpop.permute.xlu1 %1840 }
0x21a9   :  { %3314 = vmatmul.mubr.msk.f32.vlgmr.msra.gmra.mxu1 %vm170_vm5, %v1841_v35  ;;  %3360 = vmatmul.mubr.msk.f32.vlgmr.msra.gmra.mxu0 %vm170_vm5, %v1841_v35 }
0x21aa   :  { %3317 = vmatpush3.msra.mxu1 %v3980_v8  ;;  %3348 = vmatprep.mubr.msk.f32.mxu1 %vm3626_vm0, %v3625_v3 }
0x21ab   :  { %3318 = vmatprep.subr.mxu1 %v3625_v3  ;;  %3363 = vmatpush3.msra.mxu0 %v4155_v49 }
0x21ac   :  { %3319 = vmatpush3.msra.mxu1 %v3985_v59  ;;  %3364 = vmatprep.subr.mxu0 %v3625_v3 }
0x21ad   :  { %3320 = vmatprep.subr.mxu1 %v3625_v3  ;;  %3365 = vmatpush3.msra.mxu0 %v4160_v50 }
0x21ae   :  { %3321 = vmatpush3.msra.mxu1 %v3993_v2  ;;  %3366 = vmatprep.subr.mxu0 %v3625_v3 }
0x21af   :  { %3322 = vmatprep.subr.mxu1 %v3625_v3  ;;  %3367 = vmatpush3.msra.mxu0 %v4167_v51 }
0x21b0   :  { %3323 = vmatpush3.msra.mxu1 %v4000_v37  ;;  %3368 = vmatprep.subr.mxu0 %v3625_v3 }
0x21b1   :  { %3324 = vmatprep.subr.mxu1 %v3625_v3  ;;  %3369 = vmatpush3.msra.mxu0 %v4174_v52 }
0x21b2   :  { %3325 = vmatpush3.msra.mxu1 %v4018_v61  ;;  %3370 = vmatprep.mubr.msk.f32.mxu0 %vm3626_vm0, %v3625_v3 }
0x21b3   :  { %3326 = vmatprep.subr.mxu1 %v3625_v3  ;;  %3373 = vmatprep.subr.mxu0 %v3625_v3 }
0x21b4   :  { %3327 = vmatpush3.msra.mxu1 %v4032_v63 }
0x21b5   :  { %3328 = vmatprep.subr.mxu1 %v3625_v3 }
0x21b6   :  { %3329 = vmatpush3.msra.mxu1 %v4041_v0 }
0x21b7   :  { %3330 = vmatprep.subr.mxu1 %v3625_v3 }
0x21b8   :  { %3331 = vmatpush3.msra.mxu1 %v4049_v6 }
0x21b9   :  { %3332 = vmatprep.subr.mxu1 %v3625_v3 }
0x21ba   :  { %3333 = vmatpush3.msra.mxu1 %v4056_v7 }
0x21bb   :  { %3334 = vmatprep.subr.mxu1 %v3625_v3 }
0x21bc   :  { %3335 = vmatpush3.msra.mxu1 %v4063_v9 }
0x21bd   :  { %3336 = vmatprep.subr.mxu1 %v3625_v3 }
0x21be   :  { %3337 = vmatpush3.msra.mxu1 %v4070_v11 }
0x21bf   :  { %3338 = vmatprep.subr.mxu1 %v3625_v3 }
0x21c0   :  { %3339 = vmatpush3.msra.mxu1 %v4077_v12 }
0x21c1   :  { %3340 = vmatprep.subr.mxu1 %v3625_v3 }
0x21c2   :  { %3341 = vmatpush3.msra.mxu1 %v4084_v13 }
0x21c3   :  { %3342 = vmatprep.subr.mxu1 %v3625_v3 }
0x21c4   :  { %3343 = vmatpush3.msra.mxu1 %v4091_v14 }
0x21c5   :  { %3344 = vmatprep.subr.mxu1 %v3625_v3 }
0x21c6   :  { %3345 = vmatpush3.msra.mxu1 %v4098_v15 }
0x21c7   :  { %3346 = vmatprep.subr.mxu1 %v3625_v3 }
0x21c8   :  { %3347 = vmatpush3.msra.mxu1 %v4107_v16 }
0x21c9   :  { %3408 = vmatprep.subr.mxu1 %v3625_v3 }
0x2269   :  { %v1910_v23 = vpop.f32.mrf.mxu1  ;;  %v2073_v38 = vpop.f32.mrf.mxu0 }
0x226a   :  { %v4389_v40 = vadd.f32 %v4234_v58, %v1910_v23  ;;  %v2074_v56 = vadd.f32 %v4140_v32, %v2073_v38 }
0x226b   :  { %v3315_v41 = vpop.f32.mrf.mxu1  ;;  %v3361_v42 = vpop.f32.mrf.mxu0 }
0x226c   :  { %v1914_v43 = vsel %vm1385_vm7, %v4389_v40, -inf }
0x226d   :  { %1915 = vmax.xlane.f32.xlu0 %v1914_v43 }
0x22f6   :  { %v1916_v44 = vpop.xlane.xlu0 %1915 }
0x22f7   :  { %vm1917_vm14 = vcmp.eq.f32.partialorder %v4389_v40, %v1916_v44 }
0x22f8   :  { %v1918_v45 = vsel %vm1917_vm14, %v3808_v27, 128 }
0x22f9   :  { %v1919_v46 = vsel %vm1385_vm7, %v1918_v45, 2147483647 }
0x22fa   :  { %v1921_v47 = vshra.s32 %v1919_v46, 16  ;;  %v1920_v53 = vand.u32 65535, %v1919_v46 }
0x22fc   :  { %v1923_v48 = vcvt.s32.f32 %v1921_v47  ;;  %v1922_v54 = vcvt.s32.f32 %v1920_v53 }
0x22fe   :  { %1924 = vmin.xlane.f32.xlu1 %v1923_v48 }
0x2387   :  { %v1925_v4 = vpop.xlane.xlu1 %1924 }
0x2388   :  { %vm1926_vm15 = vcmp.eq.f32.partialorder %v1923_v48, %v1925_v4  ;;  %v1931_v31 = vcvt.f32.s32 %v1925_v4 }
0x2389   :  { %v1927_v55 = vsel %vm1926_vm15, %v1922_v54, inf  ;;  %v3581_v54 = vld [vmem:[%s4619_s7 + $0x18] sm:$0xff] }
0x238a   :  { %1928 = vmin.xlane.f32.xlu0 %v1927_v55  ;;  %v1932_v60 = vshll.u32 %v1931_v31, 16  ;;  %v3582_v55 = vld [vmem:[%s4619_s7 + $0x10] sm:$0xff] }
0x23a0   :  { %2085 = vrot.lane.b32.xlu0 %v2074_v56, %s3628_s15 }
0x2413   :  { %v1929_v57 = vpop.xlane.xlu0 %1928 }
0x2414   :  { %v1930_v18 = vcvt.f32.s32 %v1929_v57 }
0x2416   :  { %v1933_v20 = vadd.s32 %v1932_v60, %v1930_v18 }
0x2417   :  { %v2086_v28 = vpop.permute.xlu0 %2085 }
0x2418   :  { %vm1934_vm1 = vcmp.eq.s32.totalorder %v3808_v27, %v1933_v20 }
0x2419   :  { %3349 = vmatmul.mubr.msk.f32.vlgmr.msra.gmra.mxu1 %vm1934_vm1, %v3627_v29 }
0x241a   :  { %3409 = vmatpush3.msra.mxu1 %v4005_v1  ;;  %3416 = vmatprep.mubr.msk.f32.mxu1 %vm3626_vm0, %v3625_v3 }
0x241b   :  { %3410 = vmatprep.subr.mxu1 %v3625_v3 }
0x241c   :  { %3411 = vmatpush3.msra.mxu1 %v4012_v10 }
0x241d   :  { %3412 = vmatprep.subr.mxu1 %v3625_v3 }
0x241e   :  { %3413 = vmatpush3.msra.mxu1 %v4024_v62 }
0x241f   :  { %3414 = vmatprep.subr.mxu1 %v3625_v3 }
0x2420   :  { %3415 = vmatpush3.msra.mxu1 %v4112_v17 }
0x2421   :  { %3419 = vmatprep.subr.mxu1 %v3625_v3 }
0x24d9   :  { %v2003_v21 = vpop.f32.mrf.mxu1 }
0x24da   :  { %v2004_v1 = vadd.f32 %v4147_v36, %v2003_v21 }
0x24db   :  { %v3350_v22 = vpop.f32.mrf.mxu1 }
0x24dc   :  { %v2077_v39 = vadd.f32 %v2074_v56, %v2004_v1  ;;  %v3583_v56 = vld [vmem:[%s4619_s7 + $0x8] sm:$0xff] }
0x24de   :  { %v2790_v5 = vmul.f32 -1.442695, %v2077_v39 }
0x24e0   :  { %3563 = vpow2.f32 %v2790_v5 }
0x24ed   :  { %v3564_v24 = vpop.eup %3563 }
0x24ee   :  { %v2081_v26 = vadd.f32 1.0, %v3564_v24 }
0x24f0   :  { %3565 = vrcp.f32 %v2081_v26 }
0x24fd   :  { %v3566_v10 = vpop.eup %3565 }
0x24fe   :  { %v2088_v30 = vmul.f32 %v3566_v10, %v2086_v28  ;;  %v2095_v23 = vsub.f32 1.0, %v3566_v10  ;;  %v2101_v41 = vmul.f32 %v3566_v10, %v4338_v34 }
0x2500   :  { %2090 = vrot.lane.b32.xlu1 %v2088_v30, %s3628_s15 }
0x2572   :  { %v2091_v62 = vpop.permute.xlu1 %2090 }
0x2573   :  { %v2093_v33 = vadd.f32 %v2091_v62, %v2004_v1 }
0x2575   :  { %3567 = vtanh.f32 %v2093_v33 }
0x2582   :  { %v3568_v35 = vpop.eup %3567 }
0x2583   :  { %2097 = vrot.lane.b32.xlu1 %v3568_v35, %s3629_s4  ;;  %v3584_v35 = vld [vmem:[%s4618_s6 + $0x78] sm:$0xff] }
0x25f5   :  { %v2098_v38 = vpop.permute.xlu1 %2097 }
0x25f6   :  { %v2100_v42 = vmul.f32 %v2098_v38, %v2095_v23  ;;  %v3585_v23 = vld [vmem:[%s4618_s6 + $0x70] sm:$0xff]  ;;  %v3586_v38 = vld [vmem:[%s4618_s6 + $0x68] sm:$0xff] }
0x25f8   :  { %v4414_v43 = vadd.f32 %v2101_v41, %v2100_v42  ;;  %v3591_v41 = vld [vmem:[%s4618_s6 + $0x40] sm:$0xff]  ;;  %v3592_v42 = vld [vmem:[%s4618_s6 + $0x38] sm:$0xff] }
0x25fa   :  { %2104 = vrot.lane.b32.xlu0 %v4414_v43, %s3629_s4 }
0x266c   :  { %v2105_v44 = vpop.permute.xlu0 %2104 }
0x266d   :  { %3371 = vmatmul.mubr.msk.f32.vlgmr.msra.gmra.mxu0 %vm170_vm5, %v2105_v44  ;;  %3417 = vmatmul.mubr.msk.f32.vlgmr.msra.gmra.mxu1 %vm170_vm5, %v2105_v44  ;;  %v3594_v44 = vld [vmem:[%s4618_s6 + $0x28] sm:$0xff] }
0x266e   :  { %3374 = vmatpush3.msra.mxu0 %v3980_v8  ;;  %3405 = vmatprep.mubr.msk.f32.mxu0 %vm3626_vm0, %v3625_v3  ;;  %v2707_v8 = vrot.slane %v4313_v25, 6 }
0x266f   :  { %3375 = vmatprep.subr.mxu0 %v3625_v3  ;;  %3420 = vmatpush3.msra.mxu1 %v4155_v49 }
0x2670   :  { %3376 = vmatpush3.msra.mxu0 %v3985_v59  ;;  %3421 = vmatprep.subr.mxu1 %v3625_v3  ;;  %v2710_v59 = vrot.slane %v4389_v40, 4 }
0x2671   :  { %3377 = vmatprep.subr.mxu0 %v3625_v3  ;;  %3422 = vmatpush3.msra.mxu1 %v4160_v50 }
0x2672   :  { %3378 = vmatpush3.msra.mxu0 %v3993_v2  ;;  %3423 = vmatprep.subr.mxu1 %v3625_v3 }
0x2673   :  { %3379 = vmatprep.subr.mxu0 %v3625_v3  ;;  %3424 = vmatpush3.msra.mxu1 %v4167_v51 }
0x2674   :  { %3380 = vmatpush3.msra.mxu0 %v4000_v37  ;;  %3425 = vmatprep.subr.mxu1 %v3625_v3 }
0x2675   :  { %3381 = vmatprep.subr.mxu0 %v3625_v3  ;;  %3426 = vmatpush3.msra.mxu1 %v4174_v52 }
0x2676   :  { %3382 = vmatpush3.msra.mxu0 %v4018_v61  ;;  %3427 = vmatprep.mubr.msk.f32.mxu1 %vm3626_vm0, %v3625_v3 }
0x2677   :  { %3383 = vmatprep.subr.mxu0 %v3625_v3  ;;  %3430 = vmatprep.subr.mxu1 %v3625_v3 }
0x2678   :  { %3384 = vmatpush3.msra.mxu0 %v4032_v63 }
0x2679   :  { %3385 = vmatprep.subr.mxu0 %v3625_v3 }
0x267a   :  { %3386 = vmatpush3.msra.mxu0 %v4041_v0 }
0x267b   :  { %3387 = vmatprep.subr.mxu0 %v3625_v3 }
0x267c   :  { %3388 = vmatpush3.msra.mxu0 %v4049_v6  ;;  %v2718_v6 = vsel %vm1385_vm7, %v4237_v19, %v2707_v8  ;;  %v3595_v8 = vld [vmem:[%s4618_s6 + $0x20] sm:$0xff] }
0x267d   :  { %3389 = vmatprep.subr.mxu0 %v3625_v3 }
0x267e   :  { %3390 = vmatpush3.msra.mxu0 %v4056_v7 }
0x267f   :  { %3391 = vmatprep.subr.mxu0 %v3625_v3 }
0x2680   :  { %3392 = vmatpush3.msra.mxu0 %v4063_v9 }
0x2681   :  { %3393 = vmatprep.subr.mxu0 %v3625_v3 }
0x2682   :  { %3394 = vmatpush3.msra.mxu0 %v4070_v11  ;;  %v2720_v11 = vsel %vm2719_vm2, %v2718_v6, %v2710_v59  ;;  %v3596_v59 = vld [vmem:[%s4618_s6 + $0x18] sm:$0xff] }
0x2683   :  { %3395 = vmatprep.subr.mxu0 %v3625_v3 }
0x2684   :  { %3396 = vmatpush3.msra.mxu0 %v4077_v12 }
0x2685   :  { %3397 = vmatprep.subr.mxu0 %v3625_v3 }
0x2686   :  { %3398 = vmatpush3.msra.mxu0 %v4084_v13 }
0x2687   :  { %3399 = vmatprep.subr.mxu0 %v3625_v3 }
0x2688   :  { %3400 = vmatpush3.msra.mxu0 %v4091_v14 }
0x2689   :  { %3401 = vmatprep.subr.mxu0 %v3625_v3 }
0x268a   :  { %3402 = vmatpush3.msra.mxu0 %v4098_v15 }
0x268b   :  { %3403 = vmatprep.subr.mxu0 %v3625_v3 }
0x268c   :  { %3404 = vmatpush3.msra.mxu0 %v4107_v16 }
0x268d   :  { %3465 = vmatprep.subr.mxu0 %v3625_v3 }
0x272d   :  { %v2174_v2 = vpop.f32.mrf.mxu0  ;;  %v2337_v37 = vpop.f32.mrf.mxu1 }
0x272e   :  { %v2175_v61 = vadd.f32 %v4234_v58, %v2174_v2  ;;  %v2338_v13 = vadd.f32 %v4140_v32, %v2337_v37  ;;  %v3597_v2 = vld [vmem:[%s4618_s6 + $0x10] sm:$0xff]  ;;  %v3598_v37 = vld [vmem:[%s4618_s6 + $0x8] sm:$0xff] }
0x272f   :  { %v3372_v63 = vpop.f32.mrf.mxu0  ;;  %v3418_v0 = vpop.f32.mrf.mxu1 }
0x2730   :  { %v2713_v7 = vrot.slane %v2175_v61, 2  ;;  %v2178_v9 = vsel %vm1385_vm7, %v2175_v61, -inf }
0x2731   :  { %2179 = vmax.xlane.f32.xlu1 %v2178_v9 }
0x2732   :  { %v2722_v12 = vsel %vm2721_vm3, %v2720_v11, %v2713_v7 }
0x2733   :  { %2725 = vst [vmem:[%s4624_s12] sm:$0xff] %v2722_v12 }
0x2742   :  { %2349 = vrot.lane.b32.xlu1 %v2338_v13, %s3628_s15 }
0x27ba   :  { %v2180_v14 = vpop.xlane.xlu1 %2179 }
0x27bb   :  { %vm2181_vm4 = vcmp.eq.f32.partialorder %v2175_v61, %v2180_v14  ;;  %v3599_v61 = vld [vmem:[%s4618_s6] sm:$0xff] }
0x27bc   :  { %v2182_v15 = vsel %vm2181_vm4, %v3808_v27, 128 }
0x27bd   :  { %v2183_v16 = vsel %vm1385_vm7, %v2182_v15, 2147483647 }
0x27be   :  { %v2185_v19 = vshra.s32 %v2183_v16, 16  ;;  %v2184_v34 = vand.u32 65535, %v2183_v16  ;;  %v2350_v39 = vpop.permute.xlu1 %2349 }
0x27c0   :  { %v2187_v25 = vcvt.s32.f32 %v2185_v19  ;;  %v2186_v45 = vcvt.s32.f32 %v2184_v34 }
0x27c2   :  { %2188 = vmin.xlane.f32.xlu0 %v2187_v25 }
0x284b   :  { %v2189_v40 = vpop.xlane.xlu0 %2188 }
0x284c   :  { %vm2190_vm6 = vcmp.eq.f32.partialorder %v2187_v25, %v2189_v40  ;;  %v2195_v47 = vcvt.f32.s32 %v2189_v40  ;;  %v3600_v40 = vld [vmem:[%s4621_s9] ss:$0 sm:$0xff] }
0x284d   :  { %v2191_v46 = vsel %vm2190_vm6, %v2186_v45, inf }
0x284e   :  { %2192 = vmin.xlane.f32.xlu0 %v2191_v46  ;;  %v2196_v32 = vshll.u32 %v2195_v47, 16 }
0x28d7   :  { %v2193_v48 = vpop.xlane.xlu0 %2192 }
0x28d8   :  { %v2194_v53 = vcvt.f32.s32 %v2193_v48 }
0x28da   :  { %v2197_v4 = vadd.s32 %v2196_v32, %v2194_v53 }
0x28dc   :  { %vm2198_vm8 = vcmp.eq.s32.totalorder %v3808_v27, %v2197_v4 }
0x28dd   :  { %3406 = vmatmul.mubr.msk.f32.vlgmr.msra.gmra.mxu0 %vm2198_vm8, %v3627_v29 }
0x28de   :  { %3466 = vmatpush3.msra.mxu0 %v3581_v54  ;;  %3473 = vmatprep.mubr.msk.f32.mxu0 %vm3626_vm0, %v3625_v3  ;;  %v3601_v54 = vld [vmem:[%s4620_s8] ss:$0 sm:$0xff]  ;;  %s3631_s8 = smov [#allocation2]  }
0x28df   :  { %3467 = vmatprep.subr.mxu0 %v3625_v3  ;;  %s2738_s9 = sshll.u32 %s3631_s8, 4  ;;  %s2739_s9 = int_to_ptr.vmem [resolvable:$true] %s2738_s9 }
0x28e0   :  { %3468 = vmatpush3.msra.mxu0 %v3582_v55  ;;  %p3607_p1 = scmp.lt.s32.totalorder %s2739_s9, %s2739_s9 }
0x28e1   :  { %3469 = vmatprep.subr.mxu0 %v3625_v3 }
0x28e2   :  { %3470 = vmatpush3.msra.mxu0 %v3583_v56 }
0x28e3   :  { %3471 = vmatprep.subr.mxu0 %v3625_v3 }
0x28e4   :  { %3472 = vmatpush3.msra.mxu0 %v4112_v17 }
0x28e5   :  { %3476 = vmatprep.subr.mxu0 %v3625_v3 }
0x299d   :  { %v2267_v31 = vpop.f32.mrf.mxu0 }
0x299e   :  { %v2268_v57 = vadd.f32 %v4147_v36, %v2267_v31 }
0x299f   :  { %v3407_v60 = vpop.f32.mrf.mxu0 }
0x29a0   :  { %v2341_v18 = vadd.f32 %v2338_v13, %v2268_v57 }
0x29a2   :  { %v2795_v20 = vmul.f32 -1.442695, %v2341_v18 }
0x29a4   :  { %3569 = vpow2.f32 %v2795_v20 }
0x29b1   :  { %v3570_v21 = vpop.eup %3569 }
0x29b2   :  { %v2345_v1 = vadd.f32 1.0, %v3570_v21 }
0x29b4   :  { %3571 = vrcp.f32 %v2345_v1 }
0x29c1   :  { %v3572_v22 = vpop.eup %3571 }
0x29c2   :  { %v2352_v5 = vmul.f32 %v3572_v22, %v2350_v39  ;;  %v2359_v10 = vsub.f32 1.0, %v3572_v22  ;;  %v2365_v28 = vmul.f32 %v3572_v22, %v4414_v43  ;;  %v3593_v43 = vld [vmem:[%s4618_s6 + $0x30] sm:$0xff] }
0x29c4   :  { %2354 = vrot.lane.b32.xlu0 %v2352_v5, %s3628_s15 }
0x2a36   :  { %v2355_v24 = vpop.permute.xlu0 %2354 }
0x2a37   :  { %v2357_v26 = vadd.f32 %v2355_v24, %v2268_v57 }
0x2a39   :  { %3573 = vtanh.f32 %v2357_v26 }
0x2a46   :  { %v3574_v17 = vpop.eup %3573 }
0x2a47   :  { %2361 = vrot.lane.b32.xlu1 %v3574_v17, %s3629_s4 }
0x2ab9   :  { %v2362_v36 = vpop.permute.xlu1 %2361 }
0x2aba   :  { %v2364_v30 = vmul.f32 %v2362_v36, %v2359_v10 }
0x2abc   :  { %v4500_v62 = vadd.f32 %v2365_v28, %v2364_v30 }
0x2abe   :  { %2368 = vrot.lane.b32.xlu1 %v4500_v62, %s3629_s4 }
0x2b30   :  { %v2369_v33 = vpop.permute.xlu1 %2368 }
0x2b31   :  { %3428 = vmatmul.mubr.msk.f32.vlgmr.msra.gmra.mxu1 %vm170_vm5, %v2369_v33  ;;  %3474 = vmatmul.mubr.msk.f32.vlgmr.msra.gmra.mxu0 %vm170_vm5, %v2369_v33 }
0x2b32   :  { %3431 = vmatpush3.msra.mxu1 %v3584_v35  ;;  %3462 = vmatprep.mubr.msk.f32.mxu1 %vm3626_vm0, %v3625_v3 }
0x2b33   :  { %3432 = vmatprep.subr.mxu1 %v3625_v3  ;;  %3477 = vmatpush3.msra.mxu0 %v4155_v49  ;;  %v3587_v49 = vld [vmem:[%s4618_s6 + $0x60] sm:$0xff] }
0x2b34   :  { %3433 = vmatpush3.msra.mxu1 %v3585_v23  ;;  %3478 = vmatprep.subr.mxu0 %v3625_v3 }
0x2b35   :  { %3434 = vmatprep.subr.mxu1 %v3625_v3  ;;  %3479 = vmatpush3.msra.mxu0 %v4160_v50  ;;  %v3588_v50 = vld [vmem:[%s4618_s6 + $0x58] sm:$0xff] }
0x2b36   :  { %3435 = vmatpush3.msra.mxu1 %v3586_v38  ;;  %3480 = vmatprep.subr.mxu0 %v3625_v3 }
0x2b37   :  { %3436 = vmatprep.subr.mxu1 %v3625_v3  ;;  %3481 = vmatpush3.msra.mxu0 %v4167_v51  ;;  %v3589_v51 = vld [vmem:[%s4618_s6 + $0x50] sm:$0xff] }
0x2b38   :  { %3437 = vmatpush3.msra.mxu1 %v3587_v49  ;;  %3482 = vmatprep.subr.mxu0 %v3625_v3 }
0x2b39   :  { %3438 = vmatprep.subr.mxu1 %v3625_v3  ;;  %3483 = vmatpush3.msra.mxu0 %v4174_v52  ;;  %v3590_v52 = vld [vmem:[%s4618_s6 + $0x48] sm:$0xff] }
0x2b3a   :  { %3439 = vmatpush3.msra.mxu1 %v3588_v50  ;;  %3484 = vmatprep.mubr.msk.f32.mxu0 %vm3626_vm0, %v3625_v3 }
0x2b3b   :  { %3440 = vmatprep.subr.mxu1 %v3625_v3 }
0x2b3c   :  { %3441 = vmatpush3.msra.mxu1 %v3589_v51 }
0x2b3d   :  { %3442 = vmatprep.subr.mxu1 %v3625_v3 }
0x2b3e   :  { %3443 = vmatpush3.msra.mxu1 %v3590_v52 }
0x2b3f   :  { %3444 = vmatprep.subr.mxu1 %v3625_v3 }
0x2b40   :  { %3445 = vmatpush3.msra.mxu1 %v3591_v41 }
0x2b41   :  { %3446 = vmatprep.subr.mxu1 %v3625_v3 }
0x2b42   :  { %3447 = vmatpush3.msra.mxu1 %v3592_v42 }
0x2b43   :  { %3448 = vmatprep.subr.mxu1 %v3625_v3 }
0x2b44   :  { %3449 = vmatpush3.msra.mxu1 %v3593_v43 }
0x2b45   :  { %3450 = vmatprep.subr.mxu1 %v3625_v3 }
0x2b46   :  { %3451 = vmatpush3.msra.mxu1 %v3594_v44 }
0x2b47   :  { %3452 = vmatprep.subr.mxu1 %v3625_v3 }
0x2b48   :  { %3453 = vmatpush3.msra.mxu1 %v3595_v8 }
0x2b49   :  { %3454 = vmatprep.subr.mxu1 %v3625_v3 }
0x2b4a   :  { %3455 = vmatpush3.msra.mxu1 %v3596_v59 }
0x2b4b   :  { %3456 = vmatprep.subr.mxu1 %v3625_v3 }
0x2b4c   :  { %3457 = vmatpush3.msra.mxu1 %v3597_v2 }
0x2b4d   :  { %3458 = vmatprep.subr.mxu1 %v3625_v3 }
0x2b4e   :  { %3459 = vmatpush3.msra.mxu1 %v3598_v37 }
0x2b4f   :  { %3460 = vmatprep.subr.mxu1 %v3625_v3 }
0x2b50   :  { %3461 = vmatpush3.msra.mxu1 %v3599_v61 }
0x2bf1   :  { %v2438_v63 = vpop.f32.mrf.mxu1  ;;  %v2601_v0 = vpop.f32.mrf.mxu0 }
0x2bf2   :  { %v4581_v6 = vadd.f32 %v4234_v58, %v2438_v63  ;;  %v2602_v45 = vadd.f32 %v3600_v40, %v2601_v0 }
0x2bf3   :  { %v3429_v7 = vpop.f32.mrf.mxu1  ;;  %v3475_v9 = vpop.f32.mrf.mxu0 }
0x2bf4   :  { %v2442_v11 = vsel %vm1385_vm7, %v4581_v6, -inf }
0x2bf5   :  { %2443 = vmax.xlane.f32.xlu0 %v2442_v11 }
0x2c7e   :  { %v2444_v12 = vpop.xlane.xlu0 %2443 }
0x2c7f   :  { %vm2445_vm0 = vcmp.eq.f32.partialorder %v4581_v6, %v2444_v12 }
0x2c80   :  { %v2446_v3 = vsel %vm2445_vm0, %v3808_v27, 128 }
0x2c81   :  { %v2447_v13 = vsel %vm1385_vm7, %v2446_v3, 2147483647 }
0x2c82   :  { %v2449_v14 = vshra.s32 %v2447_v13, 16  ;;  %v2448_v16 = vand.u32 65535, %v2447_v13 }
0x2c84   :  { %v2451_v15 = vcvt.s32.f32 %v2449_v14  ;;  %v2450_v25 = vcvt.s32.f32 %v2448_v16 }
0x2c86   :  { %2452 = vmin.xlane.f32.xlu1 %v2451_v15 }
0x2d0f   :  { %v2453_v19 = vpop.xlane.xlu1 %2452 }
0x2d10   :  { %vm2454_vm9 = vcmp.eq.f32.partialorder %v2451_v15, %v2453_v19  ;;  %v2459_v46 = vcvt.f32.s32 %v2453_v19 }
0x2d11   :  { %v2455_v34 = vsel %vm2454_vm9, %v2450_v25, inf }
0x2d12   :  { %2456 = vmin.xlane.f32.xlu0 %v2455_v34  ;;  %v2460_v48 = vshll.u32 %v2459_v46, 16 }
0x2d28   :  { %2613 = vrot.lane.b32.xlu0 %v2602_v45, %s3628_s15 }
0x2d9b   :  { %v2457_v47 = vpop.xlane.xlu0 %2456 }
0x2d9c   :  { %v2458_v32 = vcvt.f32.s32 %v2457_v47 }
0x2d9e   :  { %v2461_v53 = vadd.s32 %v2460_v48, %v2458_v32 }
0x2d9f   :  { %v2614_v21 = vpop.permute.xlu0 %2613 }
0x2da0   :  { %vm2462_vm10 = vcmp.eq.s32.totalorder %v3808_v27, %v2461_v53 }
0x2da1   :  { %3463 = vmatmul.mubr.msk.f32.vlgmr.msra.gmra.mxu1 %vm2462_vm10, %v3627_v29 }
0x2e61   :  { %v2531_v4 = vpop.f32.mrf.mxu1 }
0x2e62   :  { %v2532_v55 = vadd.f32 %v3601_v54, %v2531_v4 }
0x2e63   :  { %v3464_v56 = vpop.f32.mrf.mxu1 }
0x2e64   :  { %v2605_v31 = vadd.f32 %v2602_v45, %v2532_v55 }
0x2e66   :  { %v2800_v57 = vmul.f32 -1.442695, %v2605_v31 }
0x2e68   :  { %3575 = vpow2.f32 %v2800_v57 }
0x2e75   :  { %v3576_v60 = vpop.eup %3575 }
0x2e76   :  { %v2609_v18 = vadd.f32 1.0, %v3576_v60 }
0x2e78   :  { %3577 = vrcp.f32 %v2609_v18 }
0x2e85   :  { %v3578_v20 = vpop.eup %3577 }
0x2e86   :  { %v2616_v1 = vmul.f32 %v3578_v20, %v2614_v21  ;;  %v2623_v39 = vsub.f32 1.0, %v3578_v20  ;;  %v2629_v24 = vmul.f32 %v3578_v20, %v4500_v62 }
0x2e88   :  { %2618 = vrot.lane.b32.xlu1 %v2616_v1, %s3628_s15  ;;  %s3602_s15 = scalar_lea.vmem %s2739_s9, 32 }
0x2e89   :  { %p3603_p0 = scmp.ne.s32.totalorder %s2739_s9, %s3602_s15  ;;  %p3608_p2 = scmp.lt.s32.totalorder %s3602_s15, %s3602_s15 }
0x2e8b   :  { %p3609_p3 = por %p3608_p2, %p3607_p1 }
0x2e8d   :  { %p3610_p4 = pnand %p3609_p3, %p3603_p0 }
0x2efa   :  { %v2619_v27 = vpop.permute.xlu1 %2618 }
0x2efb   :  { %v2621_v29 = vadd.f32 %v2619_v27, %v2532_v55 }
0x2efd   :  { %3579 = vtanh.f32 %v2621_v29 }
0x2f0a   :  { %v3580_v22 = vpop.eup %3579 }
0x2f0b   :  { %2625 = vrot.lane.b32.xlu1 %v3580_v22, %s3629_s4 }
0x2f7d   :  { %v2626_v5 = vpop.permute.xlu1 %2625 }
0x2f7e   :  { %v2628_v26 = vmul.f32 %v2626_v5, %v2623_v39 }
0x2f80   :  { %v2630_v17 = vadd.f32 %v2629_v24, %v2628_v26 }
0x2f82   :  { %2632 = vrot.lane.b32.xlu0 %v2630_v17, %s3629_s4 }
0x2ff4   :  { %v2633_v10 = vpop.permute.xlu0 %2632 }
0x2ff5   :  { %2729 = vst.msk [vmem:[#allocation2] sm:$0x3] %vm2728_vm11, %v2633_v10  ;;  %3485 = vmatmul.mubr.msk.f32.vlgmr.msra.gmra.mxu0 %vm170_vm5, %v2633_v10 }
0x2ff6   :  { %3613 = shalt.err (!%p3610_p4)
}
0x2ff7   :  { %2741 = dma.vmem_to_hbm [thread:$0]  %s2739_s9, 32, %s4625_s13, [#allocation3]  }
0x30b5   :  { %v2702_v36 = vpop.f32.mrf.mxu0 }
0x30b6   :  { %v2703_v28 = vadd.f32 %v4234_v58, %v2702_v36 }
0x30b7   :  { %v3486_v30 = vpop.f32.mrf.mxu0 }
0x30b8   :  { %v2716_v62 = vrot.slane %v2703_v28, 6 }
0x30ba   :  { %v2723_v33 = vsel %vm1385_vm7, %v4581_v6, %v2716_v62 }
0x30bb   :  { %v2724_v35 = vsel %vm2719_vm2, %v2723_v33, 0.0 }
0x30bc   :  { %2726 = vst [vmem:[%s4624_s12 + $0x8] sm:$0xff] %v2724_v35 }
0x30bd   :  { %3622 = dma.done.wait [#allocation3], 32  }
0x30be   :  { %3623 = vsyncadd [#allocation3], 4294967264 }
0x30bf   :  { %2747 = vsyncpa [#allocation3], 1 }

</bundles_post_ra>
